<compile_context>
chip_gen: v7x
topology: tpu7x:2x2x1
jax: 0.10.0
libtpu: 0.0.40
codegen_flags: <defaults>
</compile_context>

<pallas_src>
import functools
import math

import jax
import jax.numpy as jnp
from jax.experimental import pallas as pl
from jax.experimental.pallas import tpu as pltpu


# ---------------------------------------------------------------------------
# Kernel
# ---------------------------------------------------------------------------
def double_conv_kernel(x_ref, mask_ref, w1_ref, g1_ref, b1_ref,
                       w2_ref, g2_ref, b2_ref, o_ref, *,
                       H, W, Bt, residual, eps):
    HW = H * W
    L = Bt * HW
    offsets = [(dy, dx) for dy in (-1, 0, 1) for dx in (-1, 0, 1)]

    x = x_ref[...].astype(jnp.float32)          # (Cin, L)
    masks = mask_ref[...]                       # (9, L) f32 {0,1}; center row unused

    def conv3x3(inp_f32, w_ref):
        # 9 tap-accumulated MXU matmuls; taps built with XLU lane-rolls + boundary
        # masks (no jnp.pad, no materialized im2col).  bf16 operands, f32 accum.
        co = w_ref.shape[1]
        acc = jnp.zeros((co, L), jnp.float32)
        for k, (dy, dx) in enumerate(offsets):
            s = dy * W + dx                     # flattened spatial shift
            shifted = inp_f32 if s == 0 else pltpu.roll(inp_f32, (-s) % L, axis=1)
            if (dy, dx) != (0, 0):              # center tap: mask is all ones
                shifted = shifted * masks[k:k + 1, :]
            tap = shifted.astype(jnp.bfloat16)  # bf16 RHS for the MXU
            acc = acc + jnp.dot(w_ref[k], tap,
                                preferred_element_type=jnp.float32)
        return acc                              # (Co, L) f32

    def group_norm1(y, gamma, beta):
        # GroupNorm(num_groups=1): per-sample stats over (C, HW).
        # Two-pass (centered) variance in f32 for numerical robustness.
        cnt = jnp.float32(y.shape[0] * HW)
        mus, invs = [], []
        for b in range(Bt):                     # Bt is small & static -> unrolled
            seg = y[:, b * HW:(b + 1) * HW]
            mu = jnp.sum(seg) / cnt
            var = jnp.sum((seg - mu) * (seg - mu)) / cnt
            inv = jax.lax.rsqrt(var + eps)
            mus.append(jnp.broadcast_to(mu.reshape(1, 1), (1, HW)))
            invs.append(jnp.broadcast_to(inv.reshape(1, 1), (1, HW)))
        mu_l = jnp.concatenate(mus, axis=1)     # (1, L)
        inv_l = jnp.concatenate(invs, axis=1)   # (1, L)
        return (y - mu_l) * (inv_l * gamma) + beta   # gamma/beta: (C, 1)

    def gelu(v):  # exact erf GELU (PyTorch nn.GELU default)
        # TODO(synk): tanh-approx GELU would move this onto the (idle) EUP slot.
        return 0.5 * v * (1.0 + jax.lax.erf(v * (1.0 / math.sqrt(2.0))))

    h = conv3x3(x, w1_ref)                                       # (Cmid, L)
    h = gelu(group_norm1(h, g1_ref[...], b1_ref[...]))
    y = conv3x3(h, w2_ref)                                       # (Cout, L)
    y = group_norm1(y, g2_ref[...], b2_ref[...])
    if residual:
        y = gelu(x + y)

    o_ref[...] = y.astype(o_ref.dtype)


# ---------------------------------------------------------------------------
# Wrapper (takes PyTorch-style NCHW input and OIHW conv weights)
# ---------------------------------------------------------------------------
def double_conv(x_nchw, w1_oihw, g1, b1, w2_oihw, g2, b2, *,
                residual=False, eps=1e-5):
    """x_nchw: (N, Cin, H, W); w*_oihw: (Co, Ci, 3, 3); g*/b*: (C,).
    Returns (N, Cout, H, W)."""
    N, Cin, H, W = x_nchw.shape
    Cmid = w1_oihw.shape[0]
    Cout = w2_oihw.shape[0]
    HW = H * W
    if residual:
        assert Cin == Cout, "residual path requires in_channels == out_channels"

    # Pack Bt samples along the lane axis per grid step (target >=1024 lanes).
    Bt = max(1, min(N, 2048 // HW))
    Np = pl.cdiv(N, Bt) * Bt
    if (Bt * HW) % 128 != 0:
        # Fall back to a single grid step so the block equals the full array
        # (the (8,128) divisibility rule then does not apply).
        Bt = N
        Np = N
    L = Bt * HW

    xp = x_nchw
    if Np != N:  # pad batch with zero samples (GroupNorm on them stays finite)
        xp = jnp.concatenate(
            [xp, jnp.zeros((Np - N, Cin, H, W), xp.dtype)], axis=0)

    # Channel-major with samples packed on lanes: (Cin, Np*HW).
    x_cm = jnp.transpose(xp, (1, 0, 2, 3)).reshape(Cin, Np * HW)

    # Per-tap conv weights (9, Co, Ci), bf16 for the MXU (f32 accumulation in-kernel).
    w1t = jnp.transpose(w1_oihw, (2, 3, 0, 1)).reshape(9, Cmid, Cin).astype(jnp.bfloat16)
    w2t = jnp.transpose(w2_oihw, (2, 3, 0, 1)).reshape(9, Cout, Cmid).astype(jnp.bfloat16)
    g1c = g1.astype(jnp.float32).reshape(Cmid, 1)
    b1c = b1.astype(jnp.float32).reshape(Cmid, 1)
    g2c = g2.astype(jnp.float32).reshape(Cout, 1)
    b2c = b2.astype(jnp.float32).reshape(Cout, 1)

    # Boundary masks hoisted out of the kernel: (9, L), tiled per sample, resident
    # across all grid steps (constant index_map).  Row 4 (center tap) is unused.
    pos = jnp.arange(HW, dtype=jnp.int32)
    row = pos // W
    col = pos % W
    offsets = [(dy, dx) for dy in (-1, 0, 1) for dx in (-1, 0, 1)]
    mrows = []
    for (dy, dx) in offsets:
        m = (((row + dy) >= 0) & ((row + dy) < H) &
             ((col + dx) >= 0) & ((col + dx) < W)).astype(jnp.float32)
        mrows.append(jnp.tile(m, Bt))
    mask_arr = jnp.stack(mrows, axis=0)          # (9, L)

    kernel = functools.partial(double_conv_kernel, H=H, W=W, Bt=Bt,
                               residual=residual, eps=eps)

    out_cm = pl.pallas_call(
        kernel,
        out_shape=jax.ShapeDtypeStruct((Cout, Np * HW), x_nchw.dtype),
        grid_spec=pltpu.PrefetchScalarGridSpec(
            num_scalar_prefetch=0,
            grid=(Np // Bt,),
            in_specs=[
                pl.BlockSpec((Cin, L), lambda i: (0, i)),        # activations
                pl.BlockSpec((9, L), lambda i: (0, 0)),          # boundary masks
                pl.BlockSpec((9, Cmid, Cin), lambda i: (0, 0, 0)),
                pl.BlockSpec((Cmid, 1), lambda i: (0, 0)),
                pl.BlockSpec((Cmid, 1), lambda i: (0, 0)),
                pl.BlockSpec((9, Cout, Cmid), lambda i: (0, 0, 0)),
                pl.BlockSpec((Cout, 1), lambda i: (0, 0)),
                pl.BlockSpec((Cout, 1), lambda i: (0, 0)),
            ],
            # Lane-dense output block (L is a multiple of 128) -> unmasked stores.
            out_specs=pl.BlockSpec((Cout, L), lambda i: (0, i)),
        ),
        compiler_params=pltpu.CompilerParams(
            dimension_semantics=("parallel",),      # batch groups across TensorCores
            vmem_limit_bytes=64 * 1024 * 1024,       # raise scoped VMEM (tune per gen)
        ),
    )(x_cm, mask_arr, w1t, g1c, b1c, w2t, g2c, b2c)

    out = out_cm[:, :N * HW].reshape(Cout, N, H, W)
    return jnp.transpose(out, (1, 0, 2, 3))


# ---------------------------------------------------------------------------
# Pure-JAX reference (for correctness check)
# ---------------------------------------------------------------------------
def reference_double_conv(x, w1_oihw, g1, b1, w2_oihw, g2, b2, *,
                          residual=False, eps=1e-5):
    def conv(inp, w):
        return jax.lax.conv_general_dilated(
            inp, w, window_strides=(1, 1), padding=((1, 1), (1, 1)),
            dimension_numbers=('NCHW', 'OIHW', 'NCHW'),
            precision=jax.lax.Precision.HIGHEST)

    def gn(y, gamma, beta):
        mu = jnp.mean(y, axis=(1, 2, 3), keepdims=True)
        var = jnp.mean((y - mu) ** 2, axis=(1, 2, 3), keepdims=True)
        yn = (y - mu) / jnp.sqrt(var + eps)
        return yn * gamma[None, :, None, None] + beta[None, :, None, None]

    h = conv(x, w1_oihw)
    h = gn(h, g1, b1)
    h = jax.nn.gelu(h, approximate=False)
    y = conv(h, w2_oihw)
    y = gn(y, g2, b2)
    if residual:
        y = jax.nn.gelu(x + y, approximate=False)
    return y


# ---------------------------------------------------------------------------
# Main
# ---------------------------------------------------------------------------
if __name__ == "__main__":
    key = jax.random.PRNGKey(0)
    N, Cin, H, W = 2, 4, 16, 16
    Cout = 8
    Cmid = Cout  # mid_channels defaults to out_channels in the PyTorch module

    k_x, k_w1, k_w2, k_g1, k_b1, k_g2, k_b2 = jax.random.split(key, 7)
    x = jax.random.normal(k_x, (N, Cin, H, W), jnp.float32)

    bound1 = 1.0 / math.sqrt(Cin * 9)
    w1_oihw = jax.random.uniform(k_w1, (Cmid, Cin, 3, 3), jnp.float32,
                                 -bound1, bound1)
    bound2 = 1.0 / math.sqrt(Cmid * 9)
    w2_oihw = jax.random.uniform(k_w2, (Cout, Cmid, 3, 3), jnp.float32,
                                 -bound2, bound2)
    g1 = 1.0 + 0.1 * jax.random.normal(k_g1, (Cmid,), jnp.float32)
    b1 = 0.1 * jax.random.normal(k_b1, (Cmid,), jnp.float32)
    g2 = 1.0 + 0.1 * jax.random.normal(k_g2, (Cout,), jnp.float32)
    b2 = 0.1 * jax.random.normal(k_b2, (Cout,), jnp.float32)

    # Tolerance reflects the bf16 MXU path (f32 accumulation, f32 GN/GELU).
    ATOL = RTOL = 2e-2

    # --- non-residual DoubleConv(4 -> 8) ---
    out = double_conv(x, w1_oihw, g1, b1, w2_oihw, g2, b2, residual=False)
    out = jax.block_until_ready(out)
    ref = reference_double_conv(x, w1_oihw, g1, b1, w2_oihw, g2, b2,
                                residual=False)
    assert out.shape == (N, Cout, H, W)
    assert jnp.allclose(out, ref, atol=ATOL, rtol=RTOL), "mismatch (non-residual)"

    # --- residual DoubleConv(4 -> 4, residual=True) ---
    w1r_oihw = jax.random.uniform(k_w1, (Cin, Cin, 3, 3), jnp.float32,
                                  -bound1, bound1)
    w2r_oihw = jax.random.uniform(k_w2, (Cin, Cin, 3, 3), jnp.float32,
                                  -bound1, bound1)
    g1r, b1r = g1[:Cin], b1[:Cin]
    g2r, b2r = g2[:Cin], b2[:Cin]
    out_r = double_conv(x, w1r_oihw, g1r, b1r, w2r_oihw, g2r, b2r,
                        residual=True)
    out_r = jax.block_until_ready(out_r)
    ref_r = reference_double_conv(x, w1r_oihw, g1r, b1r, w2r_oihw, g2r, b2r,
                                  residual=True)
    assert out_r.shape == (N, Cin, H, W)
    assert jnp.allclose(out_r, ref_r, atol=ATOL, rtol=RTOL), "mismatch (residual)"

    # --- non-square spatial check (H != W) exercises the roll+mask im2col ---
    x3 = jax.random.normal(k_x, (N, Cin, 8, 16), jnp.float32)
    out3 = double_conv(x3, w1_oihw, g1, b1, w2_oihw, g2, b2, residual=False)
    out3 = jax.block_until_ready(out3)
    ref3 = reference_double_conv(x3, w1_oihw, g1, b1, w2_oihw, g2, b2,
                                 residual=False)
    assert out3.shape == (N, Cout, 8, 16)
    assert jnp.allclose(out3, ref3, atol=ATOL, rtol=RTOL), "mismatch (H != W)"

    print("KERNEL_OK")
</pallas_src>

<mosaic_0001>
module attributes {stable_mosaic.version = 11 : i64} {
  func.func @double_conv_kernel(%arg0: i32, %arg1: memref<4x512xf32, #tpu.memory_space<vmem>>, %arg2: memref<9x512xf32, #tpu.memory_space<vmem>>, %arg3: memref<9x8x4xbf16, #tpu.memory_space<vmem>>, %arg4: memref<8x1xf32, #tpu.memory_space<vmem>>, %arg5: memref<8x1xf32, #tpu.memory_space<vmem>>, %arg6: memref<9x8x8xbf16, #tpu.memory_space<vmem>>, %arg7: memref<8x1xf32, #tpu.memory_space<vmem>>, %arg8: memref<8x1xf32, #tpu.memory_space<vmem>>, %arg9: memref<8x512xf32, #tpu.memory_space<vmem>>) attributes {dimension_semantics = [#tpu.dimension_semantics<parallel>], iteration_bounds = array<i64: 1>, scalar_prefetch = 0 : i64, scratch_operands = 0 : i64, tpu.core_type = #tpu.core_type<tc>, window_params = [{transform_indices = @transform_0, window_bounds = array<i64: 4, 512>}, {pipeline_mode = #tpu.pipeline_mode<synchronous>, transform_indices = @transform_1, window_bounds = array<i64: 9, 512>}, {pipeline_mode = #tpu.pipeline_mode<synchronous>, transform_indices = @transform_2, window_bounds = array<i64: 9, 8, 4>}, {pipeline_mode = #tpu.pipeline_mode<synchronous>, transform_indices = @transform_3, window_bounds = array<i64: 8, 1>}, {pipeline_mode = #tpu.pipeline_mode<synchronous>, transform_indices = @transform_4, window_bounds = array<i64: 8, 1>}, {pipeline_mode = #tpu.pipeline_mode<synchronous>, transform_indices = @transform_5, window_bounds = array<i64: 9, 8, 8>}, {pipeline_mode = #tpu.pipeline_mode<synchronous>, transform_indices = @transform_6, window_bounds = array<i64: 8, 1>}, {pipeline_mode = #tpu.pipeline_mode<synchronous>, transform_indices = @transform_7, window_bounds = array<i64: 8, 1>}, {transform_indices = @transform_8, window_bounds = array<i64: 8, 512>}]} {
    %c0 = arith.constant 0 : index
    %c0_0 = arith.constant 0 : index
    %0 = vector.load %arg1[%c0, %c0_0] : memref<4x512xf32, #tpu.memory_space<vmem>>, vector<4x512xf32>
    %c0_1 = arith.constant 0 : index
    %c0_2 = arith.constant 0 : index
    %1 = vector.load %arg2[%c0_1, %c0_2] : memref<9x512xf32, #tpu.memory_space<vmem>>, vector<9x512xf32>
    %cst = arith.constant 0.000000e+00 : f32
    %2 = vector.broadcast %cst : f32 to vector<8x512xf32>
    %c17_i32 = arith.constant 17 : i32
    %3 = tpu.dynamic_rotate %0 by %c17_i32 dim 1 : vector<4x512xf32>, i32 -> vector<4x512xf32>
    %4 = vector.extract_strided_slice %1 {offsets = [0, 0], sizes = [1, 512], strides = [1, 1]} : vector<9x512xf32> to vector<1x512xf32>
    %5 = vector.broadcast %4 : vector<1x512xf32> to vector<4x512xf32>
    %6 = arith.mulf %3, %5 : vector<4x512xf32>
    %7 = arith.truncf %6 : vector<4x512xf32> to vector<4x512xbf16>
    %c0_3 = arith.constant 0 : index
    %c0_4 = arith.constant 0 : index
    %c0_5 = arith.constant 0 : index
    %8 = vector.load %arg3[%c0_3, %c0_4, %c0_5] : memref<9x8x4xbf16, #tpu.memory_space<vmem>>, vector<1x8x4xbf16>
    %9 = vector.shape_cast %8 : vector<1x8x4xbf16> to vector<8x4xbf16>
    %cst_6 = arith.constant dense<0.000000e+00> : vector<8x512xf32>
    %10 = tpu.matmul %9, %7, %cst_6 {dimension_numbers = #tpu.dot_dimension_numbers<[1], [0], [0], [1], [0, 0, 1, 1], [], []>} : vector<8x4xbf16>, vector<4x512xbf16>, vector<8x512xf32> -> vector<8x512xf32>
    %11 = arith.addf %2, %10 : vector<8x512xf32>
    %c16_i32 = arith.constant 16 : i32
    %12 = tpu.dynamic_rotate %0 by %c16_i32 dim 1 : vector<4x512xf32>, i32 -> vector<4x512xf32>
    %13 = vector.extract_strided_slice %1 {offsets = [1, 0], sizes = [1, 512], strides = [1, 1]} : vector<9x512xf32> to vector<1x512xf32>
    %14 = vector.broadcast %13 : vector<1x512xf32> to vector<4x512xf32>
    %15 = arith.mulf %12, %14 : vector<4x512xf32>
    %16 = arith.truncf %15 : vector<4x512xf32> to vector<4x512xbf16>
    %c1 = arith.constant 1 : index
    %c0_7 = arith.constant 0 : index
    %c0_8 = arith.constant 0 : index
    %17 = vector.load %arg3[%c1, %c0_7, %c0_8] : memref<9x8x4xbf16, #tpu.memory_space<vmem>>, vector<1x8x4xbf16>
    %18 = vector.shape_cast %17 : vector<1x8x4xbf16> to vector<8x4xbf16>
    %cst_9 = arith.constant dense<0.000000e+00> : vector<8x512xf32>
    %19 = tpu.matmul %18, %16, %cst_9 {dimension_numbers = #tpu.dot_dimension_numbers<[1], [0], [0], [1], [0, 0, 1, 1], [], []>} : vector<8x4xbf16>, vector<4x512xbf16>, vector<8x512xf32> -> vector<8x512xf32>
    %20 = arith.addf %11, %19 : vector<8x512xf32>
    %c15_i32 = arith.constant 15 : i32
    %21 = tpu.dynamic_rotate %0 by %c15_i32 dim 1 : vector<4x512xf32>, i32 -> vector<4x512xf32>
    %22 = vector.extract_strided_slice %1 {offsets = [2, 0], sizes = [1, 512], strides = [1, 1]} : vector<9x512xf32> to vector<1x512xf32>
    %23 = vector.broadcast %22 : vector<1x512xf32> to vector<4x512xf32>
    %24 = arith.mulf %21, %23 : vector<4x512xf32>
    %25 = arith.truncf %24 : vector<4x512xf32> to vector<4x512xbf16>
    %c2 = arith.constant 2 : index
    %c0_10 = arith.constant 0 : index
    %c0_11 = arith.constant 0 : index
    %26 = vector.load %arg3[%c2, %c0_10, %c0_11] : memref<9x8x4xbf16, #tpu.memory_space<vmem>>, vector<1x8x4xbf16>
    %27 = vector.shape_cast %26 : vector<1x8x4xbf16> to vector<8x4xbf16>
    %cst_12 = arith.constant dense<0.000000e+00> : vector<8x512xf32>
    %28 = tpu.matmul %27, %25, %cst_12 {dimension_numbers = #tpu.dot_dimension_numbers<[1], [0], [0], [1], [0, 0, 1, 1], [], []>} : vector<8x4xbf16>, vector<4x512xbf16>, vector<8x512xf32> -> vector<8x512xf32>
    %29 = arith.addf %20, %28 : vector<8x512xf32>
    %c1_i32 = arith.constant 1 : i32
    %30 = tpu.dynamic_rotate %0 by %c1_i32 dim 1 : vector<4x512xf32>, i32 -> vector<4x512xf32>
    %31 = vector.extract_strided_slice %1 {offsets = [3, 0], sizes = [1, 512], strides = [1, 1]} : vector<9x512xf32> to vector<1x512xf32>
    %32 = vector.broadcast %31 : vector<1x512xf32> to vector<4x512xf32>
    %33 = arith.mulf %30, %32 : vector<4x512xf32>
    %34 = arith.truncf %33 : vector<4x512xf32> to vector<4x512xbf16>
    %c3 = arith.constant 3 : index
    %c0_13 = arith.constant 0 : index
    %c0_14 = arith.constant 0 : index
    %35 = vector.load %arg3[%c3, %c0_13, %c0_14] : memref<9x8x4xbf16, #tpu.memory_space<vmem>>, vector<1x8x4xbf16>
    %36 = vector.shape_cast %35 : vector<1x8x4xbf16> to vector<8x4xbf16>
    %cst_15 = arith.constant dense<0.000000e+00> : vector<8x512xf32>
    %37 = tpu.matmul %36, %34, %cst_15 {dimension_numbers = #tpu.dot_dimension_numbers<[1], [0], [0], [1], [0, 0, 1, 1], [], []>} : vector<8x4xbf16>, vector<4x512xbf16>, vector<8x512xf32> -> vector<8x512xf32>
    %38 = arith.addf %29, %37 : vector<8x512xf32>
    %39 = arith.truncf %0 : vector<4x512xf32> to vector<4x512xbf16>
    %c4 = arith.constant 4 : index
    %c0_16 = arith.constant 0 : index
    %c0_17 = arith.constant 0 : index
    %40 = vector.load %arg3[%c4, %c0_16, %c0_17] : memref<9x8x4xbf16, #tpu.memory_space<vmem>>, vector<1x8x4xbf16>
    %41 = vector.shape_cast %40 : vector<1x8x4xbf16> to vector<8x4xbf16>
    %cst_18 = arith.constant dense<0.000000e+00> : vector<8x512xf32>
    %42 = tpu.matmul %41, %39, %cst_18 {dimension_numbers = #tpu.dot_dimension_numbers<[1], [0], [0], [1], [0, 0, 1, 1], [], []>} : vector<8x4xbf16>, vector<4x512xbf16>, vector<8x512xf32> -> vector<8x512xf32>
    %43 = arith.addf %38, %42 : vector<8x512xf32>
    %c511_i32 = arith.constant 511 : i32
    %44 = tpu.dynamic_rotate %0 by %c511_i32 dim 1 : vector<4x512xf32>, i32 -> vector<4x512xf32>
    %45 = vector.extract_strided_slice %1 {offsets = [5, 0], sizes = [1, 512], strides = [1, 1]} : vector<9x512xf32> to vector<1x512xf32>
    %46 = vector.broadcast %45 : vector<1x512xf32> to vector<4x512xf32>
    %47 = arith.mulf %44, %46 : vector<4x512xf32>
    %48 = arith.truncf %47 : vector<4x512xf32> to vector<4x512xbf16>
    %c5 = arith.constant 5 : index
    %c0_19 = arith.constant 0 : index
    %c0_20 = arith.constant 0 : index
    %49 = vector.load %arg3[%c5, %c0_19, %c0_20] : memref<9x8x4xbf16, #tpu.memory_space<vmem>>, vector<1x8x4xbf16>
    %50 = vector.shape_cast %49 : vector<1x8x4xbf16> to vector<8x4xbf16>
    %cst_21 = arith.constant dense<0.000000e+00> : vector<8x512xf32>
    %51 = tpu.matmul %50, %48, %cst_21 {dimension_numbers = #tpu.dot_dimension_numbers<[1], [0], [0], [1], [0, 0, 1, 1], [], []>} : vector<8x4xbf16>, vector<4x512xbf16>, vector<8x512xf32> -> vector<8x512xf32>
    %52 = arith.addf %43, %51 : vector<8x512xf32>
    %c497_i32 = arith.constant 497 : i32
    %53 = tpu.dynamic_rotate %0 by %c497_i32 dim 1 : vector<4x512xf32>, i32 -> vector<4x512xf32>
    %54 = vector.extract_strided_slice %1 {offsets = [6, 0], sizes = [1, 512], strides = [1, 1]} : vector<9x512xf32> to vector<1x512xf32>
    %55 = vector.broadcast %54 : vector<1x512xf32> to vector<4x512xf32>
    %56 = arith.mulf %53, %55 : vector<4x512xf32>
    %57 = arith.truncf %56 : vector<4x512xf32> to vector<4x512xbf16>
    %c6 = arith.constant 6 : index
    %c0_22 = arith.constant 0 : index
    %c0_23 = arith.constant 0 : index
    %58 = vector.load %arg3[%c6, %c0_22, %c0_23] : memref<9x8x4xbf16, #tpu.memory_space<vmem>>, vector<1x8x4xbf16>
    %59 = vector.shape_cast %58 : vector<1x8x4xbf16> to vector<8x4xbf16>
    %cst_24 = arith.constant dense<0.000000e+00> : vector<8x512xf32>
    %60 = tpu.matmul %59, %57, %cst_24 {dimension_numbers = #tpu.dot_dimension_numbers<[1], [0], [0], [1], [0, 0, 1, 1], [], []>} : vector<8x4xbf16>, vector<4x512xbf16>, vector<8x512xf32> -> vector<8x512xf32>
    %61 = arith.addf %52, %60 : vector<8x512xf32>
    %c496_i32 = arith.constant 496 : i32
    %62 = tpu.dynamic_rotate %0 by %c496_i32 dim 1 : vector<4x512xf32>, i32 -> vector<4x512xf32>
    %63 = vector.extract_strided_slice %1 {offsets = [7, 0], sizes = [1, 512], strides = [1, 1]} : vector<9x512xf32> to vector<1x512xf32>
    %64 = vector.broadcast %63 : vector<1x512xf32> to vector<4x512xf32>
    %65 = arith.mulf %62, %64 : vector<4x512xf32>
    %66 = arith.truncf %65 : vector<4x512xf32> to vector<4x512xbf16>
    %c7 = arith.constant 7 : index
    %c0_25 = arith.constant 0 : index
    %c0_26 = arith.constant 0 : index
    %67 = vector.load %arg3[%c7, %c0_25, %c0_26] : memref<9x8x4xbf16, #tpu.memory_space<vmem>>, vector<1x8x4xbf16>
    %68 = vector.shape_cast %67 : vector<1x8x4xbf16> to vector<8x4xbf16>
    %cst_27 = arith.constant dense<0.000000e+00> : vector<8x512xf32>
    %69 = tpu.matmul %68, %66, %cst_27 {dimension_numbers = #tpu.dot_dimension_numbers<[1], [0], [0], [1], [0, 0, 1, 1], [], []>} : vector<8x4xbf16>, vector<4x512xbf16>, vector<8x512xf32> -> vector<8x512xf32>
    %70 = arith.addf %61, %69 : vector<8x512xf32>
    %c495_i32 = arith.constant 495 : i32
    %71 = tpu.dynamic_rotate %0 by %c495_i32 dim 1 : vector<4x512xf32>, i32 -> vector<4x512xf32>
    %72 = vector.extract_strided_slice %1 {offsets = [8, 0], sizes = [1, 512], strides = [1, 1]} : vector<9x512xf32> to vector<1x512xf32>
    %73 = vector.broadcast %72 : vector<1x512xf32> to vector<4x512xf32>
    %74 = arith.mulf %71, %73 : vector<4x512xf32>
    %75 = arith.truncf %74 : vector<4x512xf32> to vector<4x512xbf16>
    %c8 = arith.constant 8 : index
    %c0_28 = arith.constant 0 : index
    %c0_29 = arith.constant 0 : index
    %76 = vector.load %arg3[%c8, %c0_28, %c0_29] : memref<9x8x4xbf16, #tpu.memory_space<vmem>>, vector<1x8x4xbf16>
    %77 = vector.shape_cast %76 : vector<1x8x4xbf16> to vector<8x4xbf16>
    %cst_30 = arith.constant dense<0.000000e+00> : vector<8x512xf32>
    %78 = tpu.matmul %77, %75, %cst_30 {dimension_numbers = #tpu.dot_dimension_numbers<[1], [0], [0], [1], [0, 0, 1, 1], [], []>} : vector<8x4xbf16>, vector<4x512xbf16>, vector<8x512xf32> -> vector<8x512xf32>
    %79 = arith.addf %70, %78 : vector<8x512xf32>
    %c0_31 = arith.constant 0 : index
    %c0_32 = arith.constant 0 : index
    %80 = vector.load %arg4[%c0_31, %c0_32] : memref<8x1xf32, #tpu.memory_space<vmem>>, vector<8x1xf32>
    %c0_33 = arith.constant 0 : index
    %c0_34 = arith.constant 0 : index
    %81 = vector.load %arg5[%c0_33, %c0_34] : memref<8x1xf32, #tpu.memory_space<vmem>>, vector<8x1xf32>
    %82 = vector.extract_strided_slice %79 {offsets = [0, 0], sizes = [8, 256], strides = [1, 1]} : vector<8x512xf32> to vector<8x256xf32>
    %83 = vector.shape_cast %82 : vector<8x256xf32> to vector<1x8x256xf32>
    %cst_35 = arith.constant dense<0.000000e+00> : vector<1xf32>
    %84 = vector.multi_reduction <add>, %83, %cst_35 [1, 2] : vector<1x8x256xf32> to vector<1xf32>
    %85 = vector.shape_cast %84 : vector<1xf32> to vector<1x1x1xf32>
    %86 = vector.extract %85[0, 0, 0] : f32 from vector<1x1x1xf32>
    %cst_36 = arith.constant 2.048000e+03 : f32
    %87 = arith.divf %86, %cst_36 : f32
    %88 = vector.broadcast %87 : f32 to vector<8x256xf32>
    %89 = arith.subf %82, %88 : vector<8x256xf32>
    %90 = vector.broadcast %87 : f32 to vector<8x256xf32>
    %91 = arith.subf %82, %90 : vector<8x256xf32>
    %92 = arith.mulf %89, %91 : vector<8x256xf32>
    %93 = vector.shape_cast %92 : vector<8x256xf32> to vector<1x8x256xf32>
    %cst_37 = arith.constant dense<0.000000e+00> : vector<1xf32>
    %94 = vector.multi_reduction <add>, %93, %cst_37 [1, 2] : vector<1x8x256xf32> to vector<1xf32>
    %95 = vector.shape_cast %94 : vector<1xf32> to vector<1x1x1xf32>
    %96 = vector.extract %95[0, 0, 0] : f32 from vector<1x1x1xf32>
    %cst_38 = arith.constant 2.048000e+03 : f32
    %97 = arith.divf %96, %cst_38 : f32
    %cst_39 = arith.constant 9.99999974E-6 : f32
    %98 = arith.addf %97, %cst_39 : f32
    %99 = math.rsqrt %98 : f32
    %100 = vector.broadcast %87 : f32 to vector<1x1xf32>
    %101 = vector.shape_cast %100 : vector<1x1xf32> to vector<1x1xf32>
    %102 = vector.broadcast %101 : vector<1x1xf32> to vector<1x256xf32>
    %103 = vector.broadcast %99 : f32 to vector<1x1xf32>
    %104 = vector.shape_cast %103 : vector<1x1xf32> to vector<1x1xf32>
    %105 = vector.broadcast %104 : vector<1x1xf32> to vector<1x256xf32>
    %106 = vector.extract_strided_slice %79 {offsets = [0, 256], sizes = [8, 256], strides = [1, 1]} : vector<8x512xf32> to vector<8x256xf32>
    %107 = vector.shape_cast %106 : vector<8x256xf32> to vector<1x8x256xf32>
    %cst_40 = arith.constant dense<0.000000e+00> : vector<1xf32>
    %108 = vector.multi_reduction <add>, %107, %cst_40 [1, 2] : vector<1x8x256xf32> to vector<1xf32>
    %109 = vector.shape_cast %108 : vector<1xf32> to vector<1x1x1xf32>
    %110 = vector.extract %109[0, 0, 0] : f32 from vector<1x1x1xf32>
    %cst_41 = arith.constant 2.048000e+03 : f32
    %111 = arith.divf %110, %cst_41 : f32
    %112 = vector.broadcast %111 : f32 to vector<8x256xf32>
    %113 = arith.subf %106, %112 : vector<8x256xf32>
    %114 = vector.broadcast %111 : f32 to vector<8x256xf32>
    %115 = arith.subf %106, %114 : vector<8x256xf32>
    %116 = arith.mulf %113, %115 : vector<8x256xf32>
    %117 = vector.shape_cast %116 : vector<8x256xf32> to vector<1x8x256xf32>
    %cst_42 = arith.constant dense<0.000000e+00> : vector<1xf32>
    %118 = vector.multi_reduction <add>, %117, %cst_42 [1, 2] : vector<1x8x256xf32> to vector<1xf32>
    %119 = vector.shape_cast %118 : vector<1xf32> to vector<1x1x1xf32>
    %120 = vector.extract %119[0, 0, 0] : f32 from vector<1x1x1xf32>
    %cst_43 = arith.constant 2.048000e+03 : f32
    %121 = arith.divf %120, %cst_43 : f32
    %cst_44 = arith.constant 9.99999974E-6 : f32
    %122 = arith.addf %121, %cst_44 : f32
    %123 = math.rsqrt %122 : f32
    %124 = vector.broadcast %111 : f32 to vector<1x1xf32>
    %125 = vector.shape_cast %124 : vector<1x1xf32> to vector<1x1xf32>
    %126 = vector.broadcast %125 : vector<1x1xf32> to vector<1x256xf32>
    %127 = vector.broadcast %123 : f32 to vector<1x1xf32>
    %128 = vector.shape_cast %127 : vector<1x1xf32> to vector<1x1xf32>
    %129 = vector.broadcast %128 : vector<1x1xf32> to vector<1x256xf32>
    %130 = tpu.concatenate %102, %126 in 1 : vector<1x256xf32>, vector<1x256xf32> -> vector<1x512xf32>
    %131 = tpu.concatenate %105, %129 in 1 : vector<1x256xf32>, vector<1x256xf32> -> vector<1x512xf32>
    %132 = vector.broadcast %130 : vector<1x512xf32> to vector<8x512xf32>
    %133 = arith.subf %79, %132 : vector<8x512xf32>
    %134 = vector.broadcast %131 : vector<1x512xf32> to vector<8x512xf32>
    %135 = vector.broadcast %80 : vector<8x1xf32> to vector<8x512xf32>
    %136 = arith.mulf %134, %135 : vector<8x512xf32>
    %137 = arith.mulf %133, %136 : vector<8x512xf32>
    %138 = vector.broadcast %81 : vector<8x1xf32> to vector<8x512xf32>
    %139 = arith.addf %137, %138 : vector<8x512xf32>
    %cst_45 = arith.constant 5.000000e-01 : f32
    %140 = vector.broadcast %cst_45 : f32 to vector<8x512xf32>
    %141 = arith.mulf %140, %139 : vector<8x512xf32>
    %cst_46 = arith.constant 0.707106769 : f32
    %142 = vector.broadcast %cst_46 : f32 to vector<8x512xf32>
    %143 = arith.mulf %139, %142 : vector<8x512xf32>
    %144 = math.erf %143 : vector<8x512xf32>
    %cst_47 = arith.constant 1.000000e+00 : f32
    %145 = vector.broadcast %cst_47 : f32 to vector<8x512xf32>
    %146 = arith.addf %145, %144 : vector<8x512xf32>
    %147 = arith.mulf %141, %146 : vector<8x512xf32>
    %cst_48 = arith.constant 0.000000e+00 : f32
    %148 = vector.broadcast %cst_48 : f32 to vector<8x512xf32>
    %c17_i32_49 = arith.constant 17 : i32
    %149 = tpu.dynamic_rotate %147 by %c17_i32_49 dim 1 : vector<8x512xf32>, i32 -> vector<8x512xf32>
    %150 = vector.extract_strided_slice %1 {offsets = [0, 0], sizes = [1, 512], strides = [1, 1]} : vector<9x512xf32> to vector<1x512xf32>
    %151 = vector.broadcast %150 : vector<1x512xf32> to vector<8x512xf32>
    %152 = arith.mulf %149, %151 : vector<8x512xf32>
    %153 = arith.truncf %152 : vector<8x512xf32> to vector<8x512xbf16>
    %c0_50 = arith.constant 0 : index
    %c0_51 = arith.constant 0 : index
    %c0_52 = arith.constant 0 : index
    %154 = vector.load %arg6[%c0_50, %c0_51, %c0_52] : memref<9x8x8xbf16, #tpu.memory_space<vmem>>, vector<1x8x8xbf16>
    %155 = vector.shape_cast %154 : vector<1x8x8xbf16> to vector<8x8xbf16>
    %cst_53 = arith.constant dense<0.000000e+00> : vector<8x512xf32>
    %156 = tpu.matmul %155, %153, %cst_53 {dimension_numbers = #tpu.dot_dimension_numbers<[1], [0], [0], [1], [0, 0, 1, 1], [], []>} : vector<8x8xbf16>, vector<8x512xbf16>, vector<8x512xf32> -> vector<8x512xf32>
    %157 = arith.addf %148, %156 : vector<8x512xf32>
    %c16_i32_54 = arith.constant 16 : i32
    %158 = tpu.dynamic_rotate %147 by %c16_i32_54 dim 1 : vector<8x512xf32>, i32 -> vector<8x512xf32>
    %159 = vector.extract_strided_slice %1 {offsets = [1, 0], sizes = [1, 512], strides = [1, 1]} : vector<9x512xf32> to vector<1x512xf32>
    %160 = vector.broadcast %159 : vector<1x512xf32> to vector<8x512xf32>
    %161 = arith.mulf %158, %160 : vector<8x512xf32>
    %162 = arith.truncf %161 : vector<8x512xf32> to vector<8x512xbf16>
    %c1_55 = arith.constant 1 : index
    %c0_56 = arith.constant 0 : index
    %c0_57 = arith.constant 0 : index
    %163 = vector.load %arg6[%c1_55, %c0_56, %c0_57] : memref<9x8x8xbf16, #tpu.memory_space<vmem>>, vector<1x8x8xbf16>
    %164 = vector.shape_cast %163 : vector<1x8x8xbf16> to vector<8x8xbf16>
    %cst_58 = arith.constant dense<0.000000e+00> : vector<8x512xf32>
    %165 = tpu.matmul %164, %162, %cst_58 {dimension_numbers = #tpu.dot_dimension_numbers<[1], [0], [0], [1], [0, 0, 1, 1], [], []>} : vector<8x8xbf16>, vector<8x512xbf16>, vector<8x512xf32> -> vector<8x512xf32>
    %166 = arith.addf %157, %165 : vector<8x512xf32>
    %c15_i32_59 = arith.constant 15 : i32
    %167 = tpu.dynamic_rotate %147 by %c15_i32_59 dim 1 : vector<8x512xf32>, i32 -> vector<8x512xf32>
    %168 = vector.extract_strided_slice %1 {offsets = [2, 0], sizes = [1, 512], strides = [1, 1]} : vector<9x512xf32> to vector<1x512xf32>
    %169 = vector.broadcast %168 : vector<1x512xf32> to vector<8x512xf32>
    %170 = arith.mulf %167, %169 : vector<8x512xf32>
    %171 = arith.truncf %170 : vector<8x512xf32> to vector<8x512xbf16>
    %c2_60 = arith.constant 2 : index
    %c0_61 = arith.constant 0 : index
    %c0_62 = arith.constant 0 : index
    %172 = vector.load %arg6[%c2_60, %c0_61, %c0_62] : memref<9x8x8xbf16, #tpu.memory_space<vmem>>, vector<1x8x8xbf16>
    %173 = vector.shape_cast %172 : vector<1x8x8xbf16> to vector<8x8xbf16>
    %cst_63 = arith.constant dense<0.000000e+00> : vector<8x512xf32>
    %174 = tpu.matmul %173, %171, %cst_63 {dimension_numbers = #tpu.dot_dimension_numbers<[1], [0], [0], [1], [0, 0, 1, 1], [], []>} : vector<8x8xbf16>, vector<8x512xbf16>, vector<8x512xf32> -> vector<8x512xf32>
    %175 = arith.addf %166, %174 : vector<8x512xf32>
    %c1_i32_64 = arith.constant 1 : i32
    %176 = tpu.dynamic_rotate %147 by %c1_i32_64 dim 1 : vector<8x512xf32>, i32 -> vector<8x512xf32>
    %177 = vector.extract_strided_slice %1 {offsets = [3, 0], sizes = [1, 512], strides = [1, 1]} : vector<9x512xf32> to vector<1x512xf32>
    %178 = vector.broadcast %177 : vector<1x512xf32> to vector<8x512xf32>
    %179 = arith.mulf %176, %178 : vector<8x512xf32>
    %180 = arith.truncf %179 : vector<8x512xf32> to vector<8x512xbf16>
    %c3_65 = arith.constant 3 : index
    %c0_66 = arith.constant 0 : index
    %c0_67 = arith.constant 0 : index
    %181 = vector.load %arg6[%c3_65, %c0_66, %c0_67] : memref<9x8x8xbf16, #tpu.memory_space<vmem>>, vector<1x8x8xbf16>
    %182 = vector.shape_cast %181 : vector<1x8x8xbf16> to vector<8x8xbf16>
    %cst_68 = arith.constant dense<0.000000e+00> : vector<8x512xf32>
    %183 = tpu.matmul %182, %180, %cst_68 {dimension_numbers = #tpu.dot_dimension_numbers<[1], [0], [0], [1], [0, 0, 1, 1], [], []>} : vector<8x8xbf16>, vector<8x512xbf16>, vector<8x512xf32> -> vector<8x512xf32>
    %184 = arith.addf %175, %183 : vector<8x512xf32>
    %185 = arith.truncf %147 : vector<8x512xf32> to vector<8x512xbf16>
    %c4_69 = arith.constant 4 : index
    %c0_70 = arith.constant 0 : index
    %c0_71 = arith.constant 0 : index
    %186 = vector.load %arg6[%c4_69, %c0_70, %c0_71] : memref<9x8x8xbf16, #tpu.memory_space<vmem>>, vector<1x8x8xbf16>
    %187 = vector.shape_cast %186 : vector<1x8x8xbf16> to vector<8x8xbf16>
    %cst_72 = arith.constant dense<0.000000e+00> : vector<8x512xf32>
    %188 = tpu.matmul %187, %185, %cst_72 {dimension_numbers = #tpu.dot_dimension_numbers<[1], [0], [0], [1], [0, 0, 1, 1], [], []>} : vector<8x8xbf16>, vector<8x512xbf16>, vector<8x512xf32> -> vector<8x512xf32>
    %189 = arith.addf %184, %188 : vector<8x512xf32>
    %c511_i32_73 = arith.constant 511 : i32
    %190 = tpu.dynamic_rotate %147 by %c511_i32_73 dim 1 : vector<8x512xf32>, i32 -> vector<8x512xf32>
    %191 = vector.extract_strided_slice %1 {offsets = [5, 0], sizes = [1, 512], strides = [1, 1]} : vector<9x512xf32> to vector<1x512xf32>
    %192 = vector.broadcast %191 : vector<1x512xf32> to vector<8x512xf32>
    %193 = arith.mulf %190, %192 : vector<8x512xf32>
    %194 = arith.truncf %193 : vector<8x512xf32> to vector<8x512xbf16>
    %c5_74 = arith.constant 5 : index
    %c0_75 = arith.constant 0 : index
    %c0_76 = arith.constant 0 : index
    %195 = vector.load %arg6[%c5_74, %c0_75, %c0_76] : memref<9x8x8xbf16, #tpu.memory_space<vmem>>, vector<1x8x8xbf16>
    %196 = vector.shape_cast %195 : vector<1x8x8xbf16> to vector<8x8xbf16>
    %cst_77 = arith.constant dense<0.000000e+00> : vector<8x512xf32>
    %197 = tpu.matmul %196, %194, %cst_77 {dimension_numbers = #tpu.dot_dimension_numbers<[1], [0], [0], [1], [0, 0, 1, 1], [], []>} : vector<8x8xbf16>, vector<8x512xbf16>, vector<8x512xf32> -> vector<8x512xf32>
    %198 = arith.addf %189, %197 : vector<8x512xf32>
    %c497_i32_78 = arith.constant 497 : i32
    %199 = tpu.dynamic_rotate %147 by %c497_i32_78 dim 1 : vector<8x512xf32>, i32 -> vector<8x512xf32>
    %200 = vector.extract_strided_slice %1 {offsets = [6, 0], sizes = [1, 512], strides = [1, 1]} : vector<9x512xf32> to vector<1x512xf32>
    %201 = vector.broadcast %200 : vector<1x512xf32> to vector<8x512xf32>
    %202 = arith.mulf %199, %201 : vector<8x512xf32>
    %203 = arith.truncf %202 : vector<8x512xf32> to vector<8x512xbf16>
    %c6_79 = arith.constant 6 : index
    %c0_80 = arith.constant 0 : index
    %c0_81 = arith.constant 0 : index
    %204 = vector.load %arg6[%c6_79, %c0_80, %c0_81] : memref<9x8x8xbf16, #tpu.memory_space<vmem>>, vector<1x8x8xbf16>
    %205 = vector.shape_cast %204 : vector<1x8x8xbf16> to vector<8x8xbf16>
    %cst_82 = arith.constant dense<0.000000e+00> : vector<8x512xf32>
    %206 = tpu.matmul %205, %203, %cst_82 {dimension_numbers = #tpu.dot_dimension_numbers<[1], [0], [0], [1], [0, 0, 1, 1], [], []>} : vector<8x8xbf16>, vector<8x512xbf16>, vector<8x512xf32> -> vector<8x512xf32>
    %207 = arith.addf %198, %206 : vector<8x512xf32>
    %c496_i32_83 = arith.constant 496 : i32
    %208 = tpu.dynamic_rotate %147 by %c496_i32_83 dim 1 : vector<8x512xf32>, i32 -> vector<8x512xf32>
    %209 = vector.extract_strided_slice %1 {offsets = [7, 0], sizes = [1, 512], strides = [1, 1]} : vector<9x512xf32> to vector<1x512xf32>
    %210 = vector.broadcast %209 : vector<1x512xf32> to vector<8x512xf32>
    %211 = arith.mulf %208, %210 : vector<8x512xf32>
    %212 = arith.truncf %211 : vector<8x512xf32> to vector<8x512xbf16>
    %c7_84 = arith.constant 7 : index
    %c0_85 = arith.constant 0 : index
    %c0_86 = arith.constant 0 : index
    %213 = vector.load %arg6[%c7_84, %c0_85, %c0_86] : memref<9x8x8xbf16, #tpu.memory_space<vmem>>, vector<1x8x8xbf16>
    %214 = vector.shape_cast %213 : vector<1x8x8xbf16> to vector<8x8xbf16>
    %cst_87 = arith.constant dense<0.000000e+00> : vector<8x512xf32>
    %215 = tpu.matmul %214, %212, %cst_87 {dimension_numbers = #tpu.dot_dimension_numbers<[1], [0], [0], [1], [0, 0, 1, 1], [], []>} : vector<8x8xbf16>, vector<8x512xbf16>, vector<8x512xf32> -> vector<8x512xf32>
    %216 = arith.addf %207, %215 : vector<8x512xf32>
    %c495_i32_88 = arith.constant 495 : i32
    %217 = tpu.dynamic_rotate %147 by %c495_i32_88 dim 1 : vector<8x512xf32>, i32 -> vector<8x512xf32>
    %218 = vector.extract_strided_slice %1 {offsets = [8, 0], sizes = [1, 512], strides = [1, 1]} : vector<9x512xf32> to vector<1x512xf32>
    %219 = vector.broadcast %218 : vector<1x512xf32> to vector<8x512xf32>
    %220 = arith.mulf %217, %219 : vector<8x512xf32>
    %221 = arith.truncf %220 : vector<8x512xf32> to vector<8x512xbf16>
    %c8_89 = arith.constant 8 : index
    %c0_90 = arith.constant 0 : index
    %c0_91 = arith.constant 0 : index
    %222 = vector.load %arg6[%c8_89, %c0_90, %c0_91] : memref<9x8x8xbf16, #tpu.memory_space<vmem>>, vector<1x8x8xbf16>
    %223 = vector.shape_cast %222 : vector<1x8x8xbf16> to vector<8x8xbf16>
    %cst_92 = arith.constant dense<0.000000e+00> : vector<8x512xf32>
    %224 = tpu.matmul %223, %221, %cst_92 {dimension_numbers = #tpu.dot_dimension_numbers<[1], [0], [0], [1], [0, 0, 1, 1], [], []>} : vector<8x8xbf16>, vector<8x512xbf16>, vector<8x512xf32> -> vector<8x512xf32>
    %225 = arith.addf %216, %224 : vector<8x512xf32>
    %c0_93 = arith.constant 0 : index
    %c0_94 = arith.constant 0 : index
    %226 = vector.load %arg7[%c0_93, %c0_94] : memref<8x1xf32, #tpu.memory_space<vmem>>, vector<8x1xf32>
    %c0_95 = arith.constant 0 : index
    %c0_96 = arith.constant 0 : index
    %227 = vector.load %arg8[%c0_95, %c0_96] : memref<8x1xf32, #tpu.memory_space<vmem>>, vector<8x1xf32>
    %228 = vector.extract_strided_slice %225 {offsets = [0, 0], sizes = [8, 256], strides = [1, 1]} : vector<8x512xf32> to vector<8x256xf32>
    %229 = vector.shape_cast %228 : vector<8x256xf32> to vector<1x8x256xf32>
    %cst_97 = arith.constant dense<0.000000e+00> : vector<1xf32>
    %230 = vector.multi_reduction <add>, %229, %cst_97 [1, 2] : vector<1x8x256xf32> to vector<1xf32>
    %231 = vector.shape_cast %230 : vector<1xf32> to vector<1x1x1xf32>
    %232 = vector.extract %231[0, 0, 0] : f32 from vector<1x1x1xf32>
    %cst_98 = arith.constant 2.048000e+03 : f32
    %233 = arith.divf %232, %cst_98 : f32
    %234 = vector.broadcast %233 : f32 to vector<8x256xf32>
    %235 = arith.subf %228, %234 : vector<8x256xf32>
    %236 = vector.broadcast %233 : f32 to vector<8x256xf32>
    %237 = arith.subf %228, %236 : vector<8x256xf32>
    %238 = arith.mulf %235, %237 : vector<8x256xf32>
    %239 = vector.shape_cast %238 : vector<8x256xf32> to vector<1x8x256xf32>
    %cst_99 = arith.constant dense<0.000000e+00> : vector<1xf32>
    %240 = vector.multi_reduction <add>, %239, %cst_99 [1, 2] : vector<1x8x256xf32> to vector<1xf32>
    %241 = vector.shape_cast %240 : vector<1xf32> to vector<1x1x1xf32>
    %242 = vector.extract %241[0, 0, 0] : f32 from vector<1x1x1xf32>
    %cst_100 = arith.constant 2.048000e+03 : f32
    %243 = arith.divf %242, %cst_100 : f32
    %cst_101 = arith.constant 9.99999974E-6 : f32
    %244 = arith.addf %243, %cst_101 : f32
    %245 = math.rsqrt %244 : f32
    %246 = vector.broadcast %233 : f32 to vector<1x1xf32>
    %247 = vector.shape_cast %246 : vector<1x1xf32> to vector<1x1xf32>
    %248 = vector.broadcast %247 : vector<1x1xf32> to vector<1x256xf32>
    %249 = vector.broadcast %245 : f32 to vector<1x1xf32>
    %250 = vector.shape_cast %249 : vector<1x1xf32> to vector<1x1xf32>
    %251 = vector.broadcast %250 : vector<1x1xf32> to vector<1x256xf32>
    %252 = vector.extract_strided_slice %225 {offsets = [0, 256], sizes = [8, 256], strides = [1, 1]} : vector<8x512xf32> to vector<8x256xf32>
    %253 = vector.shape_cast %252 : vector<8x256xf32> to vector<1x8x256xf32>
    %cst_102 = arith.constant dense<0.000000e+00> : vector<1xf32>
    %254 = vector.multi_reduction <add>, %253, %cst_102 [1, 2] : vector<1x8x256xf32> to vector<1xf32>
    %255 = vector.shape_cast %254 : vector<1xf32> to vector<1x1x1xf32>
    %256 = vector.extract %255[0, 0, 0] : f32 from vector<1x1x1xf32>
    %cst_103 = arith.constant 2.048000e+03 : f32
    %257 = arith.divf %256, %cst_103 : f32
    %258 = vector.broadcast %257 : f32 to vector<8x256xf32>
    %259 = arith.subf %252, %258 : vector<8x256xf32>
    %260 = vector.broadcast %257 : f32 to vector<8x256xf32>
    %261 = arith.subf %252, %260 : vector<8x256xf32>
    %262 = arith.mulf %259, %261 : vector<8x256xf32>
    %263 = vector.shape_cast %262 : vector<8x256xf32> to vector<1x8x256xf32>
    %cst_104 = arith.constant dense<0.000000e+00> : vector<1xf32>
    %264 = vector.multi_reduction <add>, %263, %cst_104 [1, 2] : vector<1x8x256xf32> to vector<1xf32>
    %265 = vector.shape_cast %264 : vector<1xf32> to vector<1x1x1xf32>
    %266 = vector.extract %265[0, 0, 0] : f32 from vector<1x1x1xf32>
    %cst_105 = arith.constant 2.048000e+03 : f32
    %267 = arith.divf %266, %cst_105 : f32
    %cst_106 = arith.constant 9.99999974E-6 : f32
    %268 = arith.addf %267, %cst_106 : f32
    %269 = math.rsqrt %268 : f32
    %270 = vector.broadcast %257 : f32 to vector<1x1xf32>
    %271 = vector.shape_cast %270 : vector<1x1xf32> to vector<1x1xf32>
    %272 = vector.broadcast %271 : vector<1x1xf32> to vector<1x256xf32>
    %273 = vector.broadcast %269 : f32 to vector<1x1xf32>
    %274 = vector.shape_cast %273 : vector<1x1xf32> to vector<1x1xf32>
    %275 = vector.broadcast %274 : vector<1x1xf32> to vector<1x256xf32>
    %276 = tpu.concatenate %248, %272 in 1 : vector<1x256xf32>, vector<1x256xf32> -> vector<1x512xf32>
    %277 = tpu.concatenate %251, %275 in 1 : vector<1x256xf32>, vector<1x256xf32> -> vector<1x512xf32>
    %278 = vector.broadcast %276 : vector<1x512xf32> to vector<8x512xf32>
    %279 = arith.subf %225, %278 : vector<8x512xf32>
    %280 = vector.broadcast %277 : vector<1x512xf32> to vector<8x512xf32>
    %281 = vector.broadcast %226 : vector<8x1xf32> to vector<8x512xf32>
    %282 = arith.mulf %280, %281 : vector<8x512xf32>
    %283 = arith.mulf %279, %282 : vector<8x512xf32>
    %284 = vector.broadcast %227 : vector<8x1xf32> to vector<8x512xf32>
    %285 = arith.addf %283, %284 : vector<8x512xf32>
    %c0_107 = arith.constant 0 : index
    %c0_108 = arith.constant 0 : index
    %286 = vector.load %arg9[%c0_107, %c0_108] : memref<8x512xf32, #tpu.memory_space<vmem>>, vector<8x512xf32>
    tpu.vector_store %arg9[%c0_107, %c0_108], %285 {strides = array<i32>} : memref<8x512xf32, #tpu.memory_space<vmem>>, vector<8x512xf32>,
    return
  }
  func.func @transform_0(%arg0: i32) -> (i32, i32) {
    %c0_i32 = arith.constant 0 : i32
    %c0_i32_0 = arith.constant 0 : i32
    return %c0_i32, %arg0 : i32, i32
  }
  func.func @transform_1(%arg0: i32) -> (i32, i32) {
    %c0_i32 = arith.constant 0 : i32
    %c0_i32_0 = arith.constant 0 : i32
    %c0_i32_1 = arith.constant 0 : i32
    return %c0_i32, %c0_i32_0 : i32, i32
  }
  func.func @transform_2(%arg0: i32) -> (i32, i32, i32) {
    %c0_i32 = arith.constant 0 : i32
    %c0_i32_0 = arith.constant 0 : i32
    %c0_i32_1 = arith.constant 0 : i32
    %c0_i32_2 = arith.constant 0 : i32
    return %c0_i32, %c0_i32_0, %c0_i32_1 : i32, i32, i32
  }
  func.func @transform_3(%arg0: i32) -> (i32, i32) {
    %c0_i32 = arith.constant 0 : i32
    %c0_i32_0 = arith.constant 0 : i32
    %c0_i32_1 = arith.constant 0 : i32
    return %c0_i32, %c0_i32_0 : i32, i32
  }
  func.func @transform_4(%arg0: i32) -> (i32, i32) {
    %c0_i32 = arith.constant 0 : i32
    %c0_i32_0 = arith.constant 0 : i32
    %c0_i32_1 = arith.constant 0 : i32
    return %c0_i32, %c0_i32_0 : i32, i32
  }
  func.func @transform_5(%arg0: i32) -> (i32, i32, i32) {
    %c0_i32 = arith.constant 0 : i32
    %c0_i32_0 = arith.constant 0 : i32
    %c0_i32_1 = arith.constant 0 : i32
    %c0_i32_2 = arith.constant 0 : i32
    return %c0_i32, %c0_i32_0, %c0_i32_1 : i32, i32, i32
  }
  func.func @transform_6(%arg0: i32) -> (i32, i32) {
    %c0_i32 = arith.constant 0 : i32
    %c0_i32_0 = arith.constant 0 : i32
    %c0_i32_1 = arith.constant 0 : i32
    return %c0_i32, %c0_i32_0 : i32, i32
  }
  func.func @transform_7(%arg0: i32) -> (i32, i32) {
    %c0_i32 = arith.constant 0 : i32
    %c0_i32_0 = arith.constant 0 : i32
    %c0_i32_1 = arith.constant 0 : i32
    return %c0_i32, %c0_i32_0 : i32, i32
  }
  func.func @transform_8(%arg0: i32) -> (i32, i32) {
    %c0_i32 = arith.constant 0 : i32
    %c0_i32_0 = arith.constant 0 : i32
    return %c0_i32, %arg0 : i32, i32
  }
}

</mosaic_0001>

<bundles_post_ra>
// kernel: tpu_custom_call.1
= control target key start
LH: loop header
LB: loop body
LE: loop exit
PB: predicated region body
PF: predicated region fallthrough
CT: control target
= control target key end

     0   :  { %13 = vsyncpa [#allocation3], 0  ;;  %s4229_s0 = inlined_call_operand.hbm [shape: f32[4,512], index: 0, kind: input, shape index: {}]   ;;  %s4230_s1 = inlined_call_operand.hbm [shape: f32[9,512], index: 1, kind: input, shape index: {}]   ;;  %s4231_s2 = inlined_call_operand.hbm [shape: bf16[9,8,4], index: 2, kind: input, shape index: {}]   ;;  %s4232_s3 = inlined_call_operand.hbm [shape: f32[8,1], index: 3, kind: input, shape index: {}]   ;;  %s4233_s4 = inlined_call_operand.hbm [shape: f32[8,1], index: 4, kind: input, shape index: {}]   ;;  %s4234_s5 = inlined_call_operand.hbm [shape: bf16[9,8,8], index: 5, kind: input, shape index: {}]   ;;  %s4235_s6 = inlined_call_operand.hbm [shape: f32[8,1], index: 6, kind: input, shape index: {}]   ;;  %s4236_s7 = inlined_call_operand.hbm [shape: f32[8,1], index: 7, kind: input, shape index: {}]   ;;  %s4237_s8 = inlined_call_operand.hbm [shape: f32[8,512], index: 8, kind: output, shape index: {}]  }
   0x1   :  { %14 = vsyncpa [#allocation6], 0 }
   0x2   :  { %15 = vsyncpa [#allocation9], 0 }
   0x3   :  { %16 = vsyncpa [#allocation12], 0 }
   0x4   :  { %17 = vsyncpa [#allocation15], 0 }
   0x5   :  { %18 = vsyncpa [#allocation4], 0  ;;  %s3195_s27 = smov [#allocation5]   ;;  %s2985_s9 = scalar_lea.hbm %s4230_s1, 1024 }
   0x6   :  { %s34_s28 = sshll.u32 %s3195_s27, 4  ;;  %p2986_p0 = scmp.ne.s32.totalorder %s4230_s1, %s2985_s9  ;;  %s35_s28 = int_to_ptr.vmem [resolvable:$true] %s34_s28 }
   0x7   :  { %p2989_p1 = scmp.lt.u32.totalorder %s2985_s9, %s4230_s1 }
   0x9   :  { %p2991_p2 = pnand %p2989_p1, %p2986_p0 }
   0xb   :  { %2994 = shalt.err (!%p2991_p2)
}
   0xc   :  { %s2995_s14 = scalar_lea.vmem %s35_s28, 1024  ;;  %p3000_p4 = scmp.lt.s32.totalorder %s35_s28, %s35_s28 }
   0xd   :  { %p2996_p3 = scmp.ne.s32.totalorder %s35_s28, %s2995_s14  ;;  %p3001_p5 = scmp.lt.s32.totalorder %s2995_s14, %s2995_s14 }
   0xf   :  { %p3002_p6 = por %p3001_p5, %p3000_p4 }
  0x11   :  { %p3003_p7 = pnand %p3002_p6, %p2996_p3 }
  0x13   :  { %3006 = shalt.err (!%p3003_p7)
}
  0x14   :  { %s3196_s15 = smov 512   ;;  %s3197_s16 = smov 32  }
  0x15   :  { %40 = dma.hbm_to_vmem [thread:$0]  %s4230_s1, 1024, %s35_s28, [#allocation6], %s3196_s15, %s3196_s15, %s3197_s16  }
  0x16   :  { %s3198_s19 = smov [#allocation8]   ;;  %s3007_s23 = scalar_lea.hbm %s4232_s3, 128 }
  0x17   :  { %s59_s20 = sshll.u32 %s3198_s19, 4  ;;  %p3008_p8 = scmp.ne.s32.totalorder %s4232_s3, %s3007_s23  ;;  %s60_s20 = int_to_ptr.vmem [resolvable:$true] %s59_s20 }
  0x18   :  { %p3011_p9 = scmp.lt.u32.totalorder %s3007_s23, %s4232_s3 }
  0x1a   :  { %p3013_p10 = pnand %p3011_p9, %p3008_p8 }
  0x1c   :  { %3016 = shalt.err (!%p3013_p10)
}
  0x1d   :  { %s3017_s29 = scalar_lea.vmem %s60_s20, 128  ;;  %p3022_p12 = scmp.lt.s32.totalorder %s60_s20, %s60_s20 }
  0x1e   :  { %p3018_p11 = scmp.ne.s32.totalorder %s60_s20, %s3017_s29  ;;  %p3023_p13 = scmp.lt.s32.totalorder %s3017_s29, %s3017_s29 }
  0x20   :  { %p3024_p0 = por %p3023_p13, %p3022_p12 }
  0x22   :  { %p3025_p1 = pnand %p3024_p0, %p3018_p11 }
  0x24   :  { %3028 = shalt.err (!%p3025_p1)
}
  0x25   :  { %62 = dma.hbm_to_vmem [thread:$0]  %s4232_s3, 128, %s60_s20, [#allocation9]  }
  0x26   :  { %s3199_s30 = smov [#allocation11]   ;;  %s3200_s10 = smov [#allocation2]  }
  0x27   :  { %s78_s9 = sshll.u32 %s3199_s30, 4  ;;  %s25_s11 = sshll.u32 %s3200_s10, 4  ;;  %s79_s9 = int_to_ptr.vmem [resolvable:$true] %s78_s9  ;;  %s26_s11 = int_to_ptr.vmem [resolvable:$true] %s25_s11 }
  0x28   :  { %s3029_s14 = scalar_lea.hbm %s4234_s5, 576 }
  0x29   :  { %p3030_p2 = scmp.ne.s32.totalorder %s4234_s5, %s3029_s14  ;;  %p3033_p3 = scmp.lt.u32.totalorder %s3029_s14, %s4234_s5 }
  0x2b   :  { %p3035_p4 = pnand %p3033_p3, %p3030_p2 }
  0x2d   :  { %3038 = shalt.err (!%p3035_p4)
}
  0x2e   :  { %s3039_s3 = scalar_lea.vmem %s79_s9, 576  ;;  %p3044_p6 = scmp.lt.s32.totalorder %s79_s9, %s79_s9 }
  0x2f   :  { %p3040_p5 = scmp.ne.s32.totalorder %s79_s9, %s3039_s3  ;;  %p3045_p7 = scmp.lt.s32.totalorder %s3039_s3, %s3039_s3 }
  0x31   :  { %p3046_p8 = por %p3045_p7, %p3044_p6 }
  0x33   :  { %p3047_p9 = pnand %p3046_p8, %p3040_p5 }
  0x35   :  { %3050 = shalt.err (!%p3047_p9)
}
  0x36   :  { %s3201_s19 = smov 64   ;;  %s3202_s20 = smov 4  }
  0x37   :  { %84 = dma.hbm_to_vmem [thread:$0]  %s4234_s5, 576, %s79_s9, [#allocation12], %s3201_s19, %s3201_s19, %s3202_s20  }
  0x38   :  { %s3051_s25 = scalar_lea.hbm %s4229_s0, 256 }
  0x39   :  { %p3052_p10 = scmp.ne.s32.totalorder %s4229_s0, %s3051_s25  ;;  %p3055_p11 = scmp.lt.u32.totalorder %s3051_s25, %s4229_s0 }
  0x3b   :  { %p3057_p12 = pnand %p3055_p11, %p3052_p10 }
  0x3d   :  { %3060 = shalt.err (!%p3057_p12)
}
  0x3e   :  { %s3061_s28 = scalar_lea.vmem %s26_s11, 256  ;;  %p3066_p0 = scmp.lt.s32.totalorder %s26_s11, %s26_s11 }
  0x3f   :  { %p3062_p13 = scmp.ne.s32.totalorder %s26_s11, %s3061_s28  ;;  %p3067_p1 = scmp.lt.s32.totalorder %s3061_s28, %s3061_s28 }
  0x41   :  { %p3068_p2 = por %p3067_p1, %p3066_p0 }
  0x43   :  { %p3069_p3 = pnand %p3068_p2, %p3062_p13 }
  0x45   :  { %3072 = shalt.err (!%p3069_p3)
}
  0x46   :  { %28 = dma.hbm_to_vmem [thread:$0]  %s4229_s0, 256, %s26_s11, [#allocation3]  }
  0x47   :  { %s3203_s9 = smov [#allocation7]   ;;  %s3204_s12 = smov [#allocation10]  }
  0x48   :  { %s46_s10 = sshll.u32 %s3203_s9, 4  ;;  %s69_s13 = sshll.u32 %s3204_s12, 4  ;;  %s47_s10 = int_to_ptr.vmem [resolvable:$true] %s46_s10  ;;  %s70_s13 = int_to_ptr.vmem [resolvable:$true] %s69_s13 }
  0x49   :  { %s3073_s16 = scalar_lea.hbm %s4231_s2, 576 }
  0x4a   :  { %p3074_p4 = scmp.ne.s32.totalorder %s4231_s2, %s3073_s16  ;;  %p3077_p5 = scmp.lt.u32.totalorder %s3073_s16, %s4231_s2 }
  0x4c   :  { %p3079_p6 = pnand %p3077_p5, %p3074_p4 }
  0x4e   :  { %3082 = shalt.err (!%p3079_p6)
}
  0x4f   :  { %s3083_s0 = scalar_lea.vmem %s47_s10, 576  ;;  %p3088_p8 = scmp.lt.s32.totalorder %s47_s10, %s47_s10 }
  0x50   :  { %p3084_p7 = scmp.ne.s32.totalorder %s47_s10, %s3083_s0  ;;  %p3089_p9 = scmp.lt.s32.totalorder %s3083_s0, %s3083_s0 }
  0x52   :  { %p3090_p10 = por %p3089_p9, %p3088_p8 }
  0x54   :  { %p3091_p11 = pnand %p3090_p10, %p3084_p7 }
  0x56   :  { %3094 = shalt.err (!%p3091_p11)
}
  0x57   :  { %52 = dma.hbm_to_vmem [thread:$0]  %s4231_s2, 576, %s47_s10, [#allocation6], %s3201_s19, %s3201_s19, %s3202_s20  }
  0x58   :  { %s3095_s25 = scalar_lea.hbm %s4233_s4, 128 }
  0x59   :  { %p3096_p12 = scmp.ne.s32.totalorder %s4233_s4, %s3095_s25  ;;  %p3099_p13 = scmp.lt.u32.totalorder %s3095_s25, %s4233_s4 }
  0x5b   :  { %p3101_p0 = pnand %p3099_p13, %p3096_p12 }
  0x5d   :  { %3104 = shalt.err (!%p3101_p0)
}
  0x5e   :  { %s3105_s28 = scalar_lea.vmem %s70_s13, 128  ;;  %p3110_p2 = scmp.lt.s32.totalorder %s70_s13, %s70_s13 }
  0x5f   :  { %p3106_p1 = scmp.ne.s32.totalorder %s70_s13, %s3105_s28  ;;  %p3111_p3 = scmp.lt.s32.totalorder %s3105_s28, %s3105_s28 }
  0x61   :  { %p3112_p4 = por %p3111_p3, %p3110_p2 }
  0x63   :  { %p3113_p5 = pnand %p3112_p4, %p3106_p1 }
  0x65   :  { %3116 = shalt.err (!%p3113_p5)
}
  0x66   :  { %72 = dma.hbm_to_vmem [thread:$0]  %s4233_s4, 128, %s70_s13, [#allocation9]  }
  0x67   :  { %s3205_s20 = smov [#allocation13]   ;;  %s3206_s30 = smov [#allocation14]  }
  0x68   :  { %s91_s5 = sshll.u32 %s3205_s20, 4  ;;  %s101_s9 = sshll.u32 %s3206_s30, 4  ;;  %s92_s5 = int_to_ptr.vmem [resolvable:$true] %s91_s5  ;;  %s102_s9 = int_to_ptr.vmem [resolvable:$true] %s101_s9 }
  0x69   :  { %s3117_s14 = scalar_lea.hbm %s4235_s6, 128 }
  0x6a   :  { %p3118_p6 = scmp.ne.s32.totalorder %s4235_s6, %s3117_s14  ;;  %p3121_p7 = scmp.lt.u32.totalorder %s3117_s14, %s4235_s6 }
  0x6c   :  { %p3123_p8 = pnand %p3121_p7, %p3118_p6 }
  0x6e   :  { %3126 = shalt.err (!%p3123_p8)
}
  0x6f   :  { %s3127_s4 = scalar_lea.vmem %s92_s5, 128  ;;  %p3132_p10 = scmp.lt.s32.totalorder %s92_s5, %s92_s5 }
  0x70   :  { %p3128_p9 = scmp.ne.s32.totalorder %s92_s5, %s3127_s4  ;;  %p3133_p11 = scmp.lt.s32.totalorder %s3127_s4, %s3127_s4 }
  0x72   :  { %p3134_p12 = por %p3133_p11, %p3132_p10 }
  0x74   :  { %p3135_p13 = pnand %p3134_p12, %p3128_p9 }
  0x76   :  { %3138 = shalt.err (!%p3135_p13)
}
  0x77   :  { %94 = dma.hbm_to_vmem [thread:$0]  %s4235_s6, 128, %s92_s5, [#allocation12]  }
  0x78   :  { %s3139_s11 = scalar_lea.hbm %s4236_s7, 128 }
  0x79   :  { %p3140_p0 = scmp.ne.s32.totalorder %s4236_s7, %s3139_s11  ;;  %p3143_p1 = scmp.lt.u32.totalorder %s3139_s11, %s4236_s7 }
  0x7b   :  { %p3145_p2 = pnand %p3143_p1, %p3140_p0 }
  0x7d   :  { %3148 = shalt.err (!%p3145_p2)
}
  0x7e   :  { %s3149_s26 = scalar_lea.vmem %s102_s9, 128  ;;  %p3154_p4 = scmp.lt.s32.totalorder %s102_s9, %s102_s9 }
  0x7f   :  { %p3150_p3 = scmp.ne.s32.totalorder %s102_s9, %s3149_s26  ;;  %p3155_p5 = scmp.lt.s32.totalorder %s3149_s26, %s3149_s26 }
  0x81   :  { %p3156_p6 = por %p3155_p5, %p3154_p4 }
  0x83   :  { %p3157_p7 = pnand %p3156_p6, %p3150_p3 }
  0x85   :  { %3160 = shalt.err (!%p3157_p7)
}
  0x86   :  { %104 = dma.hbm_to_vmem [thread:$0]  %s4236_s7, 128, %s102_s9, [#allocation15]  }
  0x87   :  { %3183 = dma.done.wait [#allocation3], 256  }
  0x88   :  { %3184 = vsyncadd [#allocation3], 4294967040 }
  0x89   :  { %3185 = dma.done.wait [#allocation6], 1600  }
  0x8a   :  { %3186 = vsyncadd [#allocation6], 4294965696 }
  0x8b   :  { %3187 = dma.done.wait [#allocation9], 256  }
  0x8c   :  { %3188 = vsyncadd [#allocation9], 4294967040 }
  0x8d   :  { %3189 = dma.done.wait [#allocation12], 704  }
  0x8e   :  { %3190 = vsyncadd [#allocation12], 4294966592 }
  0x8f   :  { %3191 = dma.done.wait [#allocation15], 128  }
  0x90   :  { %3192 = vsyncadd [#allocation15], 4294967168  ;;  %v3364_v0 = vld [vmem:[#allocation2] sm:$0xff]  ;;  %v3366_v1 = vld [vmem:[#allocation2 + $0x8] sm:$0xff]  ;;  %v3207_v2 = vmov 0   ;;  %s3208_s7 = smov 16   ;;  %v154_v5 = vlaneseq }
  0x91   :  { %274 = vmatprep.mubr.bf16.mxu0 %v3207_v2  ;;  %315 = vmatprep.mubr.bf16.mxu1 %v3207_v2  ;;  %v3374_v3 = vcombine.high %v3366_v1, %v3366_v1  ;;  %v3378_v4 = vcombine.high %v3364_v0, %v3364_v0  ;;  %s3209_s29 = smov 17   ;;  %s3210_s1 = smov 15   ;;  %v3409_v8 = vld [vmem:[#allocation5] sm:$0xff]  ;;  %v3416_v10 = vld [vmem:[#allocation5 + $0x8] sm:$0xff]  ;;  %v3457_v12 = vld [vmem:[#allocation5 + $0x10] sm:$0xff]  ;;  %vm229_vm2 = vcmask 1041408  }
  0x92   :  { %186 = vrot.lane.b32.xlu0 %v3364_v0, %s3208_s7  ;;  %2965 = vset.pattern.permute.xlu1 %v3207_v2  ;;  %s3211_s28 = smov 1   ;;  %v3404_v6 = vshrl.u32 %v154_v5, 7  ;;  %s3212_s2 = smov 127   ;;  %v3459_v13 = vld [vmem:[#allocation5 + $0x18] sm:$0xff]  ;;  %v3467_v16 = vand.u32 127, %v154_v5  ;;  %vm225_vm3 = vcmask 31744  }
  0x93   :  { %2966 = vset.pattern.permute.xlu0 %v3207_v2  ;;  %192 = vrot.lane.b32.xlu1 %v3374_v3, %s3208_s7  ;;  %s3213_s19 = smov 113   ;;  %s3214_s20 = smov 112   ;;  %v3521_v40 = vld [vmem:[#allocation7 + $0x4] sm:$0xf]  ;;  %v3567_v63 = vld [vmem:[#allocation7] sm:$0xf] }
  0x94   :  { %v1103_v7 = vsub.s32 7, %v3404_v6  ;;  %s3215_s5 = smov 111   ;;  %v3470_v17 = vsub.s32 1, %v3404_v6  ;;  %vm194_vm0 = vcmp.lt.s32.totalorder %v3467_v16, 16  ;;  %v3480_v21 = vsub.s32 0, %v3404_v6 }
  0x95   :  { %vm156_vm1 = vcmp.lt.s32.totalorder %v3467_v16, 17  ;;  %v3508_v34 = vsub.s32 2, %v3404_v6  ;;  %vm429_vm4 = vcmp.lt.s32.totalorder %v3467_v16, 15  ;;  %v3539_v48 = vsub.s32 3, %v3404_v6 }
  0x96   :  { %188 = vrot.lane.b32.xlu0 %v3378_v4, %s3208_s7  ;;  %v3414_v9 = vrot.slane %v3409_v8, %v1103_v7  ;;  %v3421_v11 = vrot.slane %v3416_v10, %v1103_v7  ;;  %v3462_v14 = vrot.slane %v3457_v12, %v1103_v7  ;;  %v3465_v15 = vrot.slane %v3459_v13, %v1103_v7 }
  0x97   :  { %146 = vrot.lane.b32.xlu1 %v3364_v0, %s3209_s29  ;;  %v3475_v19 = vrot.slane %v3409_v8, %v3470_v17  ;;  %v3484_v22 = vrot.slane %v3416_v10, %v3470_v17  ;;  %v3498_v28 = vrot.slane %v3416_v10, %v3480_v21  ;;  %v3505_v32 = vrot.slane %v3409_v8, %v3480_v21 }
  0x98   :  { %v3527_v44 = vrot.slane %v3416_v10, %v3508_v34  ;;  %v3535_v47 = vrot.slane %v3409_v8, %v3508_v34  ;;  %vm569_vm5 = vcmp.lt.s32.totalorder %v3467_v16, 1  ;;  %v3556_v57 = vrot.slane %v3416_v10, %v3539_v48 }
  0x99   :  { %v3571_v7 = vrot.slane %v3409_v8, %v3539_v48  ;;  %vm816_vm6 = vcmp.lt.s32.totalorder %v3467_v16, 127  ;;  %vm956_vm7 = vcmp.lt.s32.totalorder %v3467_v16, 113  ;;  %vm1096_vm8 = vcmp.lt.s32.totalorder %v3467_v16, 112 }
  0x9a   :  { %148 = vrot.lane.b32.xlu0 %v3378_v4, %s3209_s29  ;;  %vm1236_vm9 = vcmp.lt.s32.totalorder %v3467_v16, 111  ;;  %vm1545_vm10 = vcmask 1043456   ;;  %vm1541_vm11 = vcmask 64512  }
  0x9b   :  { %152 = vrot.lane.b32.xlu1 %v3374_v3, %s3209_s29 }
  0x9e   :  { %421 = vrot.lane.b32.xlu0 %v3364_v0, %s3210_s1 }
  0x9f   :  { %423 = vrot.lane.b32.xlu1 %v3378_v4, %s3210_s1 }
  0xa2   :  { %427 = vrot.lane.b32.xlu0 %v3374_v3, %s3210_s1 }
  0xa3   :  { %561 = vrot.lane.b32.xlu1 %v3364_v0, %s3211_s28 }
  0xa6   :  { %563 = vrot.lane.b32.xlu0 %v3378_v4, %s3211_s28 }
  0xa7   :  { %567 = vrot.lane.b32.xlu1 %v3374_v3, %s3211_s28 }
  0xaa   :  { %808 = vrot.lane.b32.xlu0 %v3364_v0, %s3212_s2 }
  0xab   :  { %810 = vrot.lane.b32.xlu1 %v3378_v4, %s3212_s2 }
  0xae   :  { %812 = vrot.lane.b32.xlu0 %v3366_v1, %s3212_s2 }
  0xaf   :  { %948 = vrot.lane.b32.xlu1 %v3364_v0, %s3213_s19 }
  0xb2   :  { %950 = vrot.lane.b32.xlu0 %v3378_v4, %s3213_s19 }
  0xb3   :  { %952 = vrot.lane.b32.xlu1 %v3366_v1, %s3213_s19 }
  0xb6   :  { %1088 = vrot.lane.b32.xlu0 %v3364_v0, %s3214_s20 }
  0xb7   :  { %1090 = vrot.lane.b32.xlu1 %v3378_v4, %s3214_s20 }
  0xba   :  { %1092 = vrot.lane.b32.xlu0 %v3366_v1, %s3214_s20 }
  0xbb   :  { %1228 = vrot.lane.b32.xlu1 %v3364_v0, %s3215_s5 }
  0xbe   :  { %1230 = vrot.lane.b32.xlu0 %v3378_v4, %s3215_s5 }
  0xbf   :  { %1232 = vrot.lane.b32.xlu1 %v3366_v1, %s3215_s5 }
  0xc2   :  { %190 = vrot.lane.b32.xlu0 %v3366_v1, %s3208_s7 }
  0xc3   :  { %150 = vrot.lane.b32.xlu1 %v3366_v1, %s3209_s29 }
  0xc6   :  { %425 = vrot.lane.b32.xlu0 %v3366_v1, %s3210_s1 }
  0xc7   :  { %565 = vrot.lane.b32.xlu1 %v3366_v1, %s3211_s28 }
  0xca   :  { %814 = vrot.lane.b32.xlu0 %v3374_v3, %s3212_s2 }
  0xcb   :  { %954 = vrot.lane.b32.xlu1 %v3374_v3, %s3213_s19 }
  0xce   :  { %1094 = vrot.lane.b32.xlu0 %v3374_v3, %s3214_s20 }
  0xcf   :  { %1234 = vrot.lane.b32.xlu1 %v3374_v3, %s3215_s5 }
 0x104   :  { %v187_v18 = vpop.permute.xlu0 %186 }
 0x105   :  { %v3477_v20 = vpop.permute.xlu1 %192 }
 0x106   :  { %v198_v23 = vsel %vm194_vm0, %v3477_v20, %v187_v18 }
 0x107   :  { %v215_v24 = vmul.f32 %v3475_v19, %v198_v23 }
 0x108   :  { %v3490_v25 = vpop.permute.xlu0 %188 }
 0x109   :  { %v197_v26 = vsel %vm194_vm0, %v187_v18, %v3490_v25  ;;  %v147_v27 = vpop.permute.xlu1 %146  ;;  %v219_v30 = vpack.c.bf16 %v215_v24, %v215_v24 }
 0x10a   :  { %v216_v29 = vmul.f32 %v3484_v22, %v197_v26 }
 0x10b   :  { %v231_v38 = vsel %vm229_vm2, %v219_v30, 0 }
 0x10c   :  { %v3501_v31 = vpop.permute.xlu0 %148  ;;  %v220_v33 = vpack.c.bf16 %v216_v29, %v216_v29 }
 0x10d   :  { %v159_v35 = vsel %vm156_vm1, %v147_v27, %v3501_v31  ;;  %v3514_v37 = vpop.permute.xlu1 %152 }
 0x10e   :  { %v178_v36 = vmul.f32 %v3498_v28, %v159_v35  ;;  %2715 = vmatprep.subr.msk.bf16.mxu0 %vm229_vm2, %v220_v33  ;;  %v160_v39 = vsel %vm156_vm1, %v3514_v37, %v147_v27 }
 0x10f   :  { %243 = vmatpush1.bf16.msra.mxu0 %v231_v38  ;;  %v177_v42 = vmul.f32 %v3505_v32, %v160_v39  ;;  %v3592_v38 = vld [vmem:[#allocation7 + $0x8] sm:$0xf]  ;;  %v3595_v39 = vsub.s32 5, %v3404_v6 }
 0x110   :  { %v182_v41 = vpack.c.bf16 %v178_v36, %v178_v36  ;;  %v422_v43 = vpop.permute.xlu0 %421 }
 0x111   :  { %v181_v45 = vpack.c.bf16 %v177_v42, %v177_v42  ;;  %v3529_v46 = vpop.permute.xlu1 %423 }
 0x112   :  { %2716 = vmatmul.mubr.msk.bf16.vlgmr.msra.gmra.mrb[0].mxu0 %vm225_vm3, %v3521_v40  ;;  %2719 = vmatprep.subr.msk.bf16.mxu0 %vm229_vm2, %v182_v41  ;;  %v432_v49 = vsel %vm429_vm4, %v422_v43, %v3529_v46 }
 0x113   :  { %371 = vmatprep.mubr.bf16.mxu0 %v3207_v2  ;;  %v451_v50 = vmul.f32 %v3527_v44, %v432_v49  ;;  %v328_v52 = vsel %vm229_vm2, %v181_v45, 0  ;;  %v3610_v49 = vrot.slane %v3416_v10, %v3595_v39 }
 0x114   :  { %v3546_v51 = vpop.permute.xlu0 %427  ;;  %340 = vmatpush1.bf16.msra.mxu0 %v328_v52 }
 0x115   :  { %v433_v53 = vsel %vm429_vm4, %v3546_v51, %v422_v43  ;;  %v455_v54 = vpack.c.bf16 %v451_v50, %v451_v50  ;;  %v562_v56 = vpop.permute.xlu1 %561  ;;  %v702_v43 = vpack.c.bf16 %v3378_v4, %v3378_v4  ;;  %4240 = vst [vmem:[#allocation23_spill] sm:$0xff] %v3610_v49 }
 0x116   :  { %v450_v55 = vmul.f32 %v3535_v47, %v433_v53 }
 0x117   :  { %2723 = vmatprep.subr.msk.bf16.mxu0 %vm229_vm2, %v455_v54 }
 0x118   :  { %v454_v58 = vpack.c.bf16 %v450_v55, %v450_v55  ;;  %v3558_v59 = vpop.permute.xlu0 %563  ;;  %v701_v55 = vpack.c.bf16 %v3364_v0, %v3364_v0  ;;  %v3644_v0 = vrot.slane %v3457_v12, %v3480_v21 }
 0x119   :  { %v572_v60 = vsel %vm569_vm5, %v562_v56, %v3558_v59  ;;  %v3565_v62 = vpop.permute.xlu1 %567 }
 0x11a   :  { %v591_v61 = vmul.f32 %v3556_v57, %v572_v60  ;;  %v464_v23 = vsel %vm229_vm2, %v454_v58, 0  ;;  %v573_v24 = vsel %vm569_vm5, %v3565_v62, %v562_v56  ;;  %v3626_v56 = vsub.s32 6, %v3404_v6  ;;  %v3646_v6 = vld [vmem:[#allocation7 + $0xc] sm:$0xf] }
 0x11b   :  { %v590_v27 = vmul.f32 %v3571_v7, %v573_v24  ;;  %v3632_v60 = vrot.slane %v3457_v12, %v3470_v17 }
 0x11c   :  { %v595_v5 = vpack.c.bf16 %v591_v61, %v591_v61  ;;  %v3573_v18 = vpop.permute.xlu0 %808  ;;  %v3636_v61 = vrot.slane %v3459_v13, %v3470_v17  ;;  %v3653_v17 = vrot.slane %v3459_v13, %v3480_v21 }
 0x11d   :  { %v811_v26 = vpop.permute.xlu1 %810  ;;  %v594_v33 = vpack.c.bf16 %v590_v27, %v590_v27  ;;  %4241 = vst [vmem:[#allocation24_spill] sm:$0xff] %v3632_v60 }
 0x11e   :  { %2720 = vmatmul.mubr.msk.bf16.vlgmr.msra.gmra.mrb[0].mxu0 %vm225_vm3, %v3567_v63 }
 0x11f   :  { %476 = vmatpush1.bf16.msra.mxu0 %v464_v23  ;;  %507 = vmatprep.mubr.bf16.mxu0 %v3207_v2  ;;  %v604_v42 = vsel %vm229_vm2, %v594_v33, 0  ;;  %v819_v23 = vsel %vm816_vm6, %v3573_v18, %v811_v26  ;;  %v711_v33 = vsel %vm229_vm2, %v701_v55, 0 }
 0x120   :  { %v3583_v29 = vpop.permute.xlu0 %812  ;;  %2727 = vmatprep.subr.msk.bf16.mxu0 %vm229_vm2, %v595_v5  ;;  %v3640_v5 = vrot.slane %v3409_v8, %v3595_v39 }
 0x121   :  { %v3586_v30 = vpop.permute.xlu1 %948  ;;  %v818_v4 = vsel %vm816_vm6, %v811_v26, %v3583_v29  ;;  %v3665_v26 = vrot.slane %v3416_v10, %v3626_v56 }
 0x122   :  { %v838_v53 = vmul.f32 %v3610_v49, %v818_v4  ;;  %v837_v55 = vmul.f32 %v3640_v5, %v819_v23 }
 0x124   :  { %v3588_v35 = vpop.permute.xlu0 %950  ;;  %v842_v24 = vpack.c.bf16 %v838_v53, %v838_v53  ;;  %v3672_v53 = vrot.slane %v3459_v13, %v3508_v34 }
 0x125   :  { %v3590_v36 = vpop.permute.xlu1 %952 }
 0x128   :  { %v3597_v41 = vpop.permute.xlu0 %1088 }
 0x129   :  { %v3603_v45 = vpop.permute.xlu1 %1090 }
 0x12a   :  { %2724 = vmatmul.mubr.msk.bf16.vlgmr.msra.gmra.mrb[0].mxu0 %vm225_vm3, %v3592_v38 }
 0x12b   :  { %616 = vmatpush1.bf16.msra.mxu0 %v604_v42  ;;  %647 = vmatprep.mubr.bf16.mxu0 %v3207_v2 }
 0x12c   :  { %v3612_v50 = vpop.permute.xlu0 %1092  ;;  %2731 = vmatprep.subr.msk.bf16.mxu0 %vm229_vm2, %v702_v43 }
 0x12d   :  { %v3618_v52 = vpop.permute.xlu1 %1228 }
 0x130   :  { %v3621_v54 = vpop.permute.xlu0 %1230 }
 0x131   :  { %v3628_v58 = vpop.permute.xlu1 %1232 }
 0x134   :  { %v191_v27 = vpop.permute.xlu0 %190 }
 0x135   :  { %v195_v42 = vsel %vm194_vm0, %v191_v27, %v3477_v20  ;;  %v196_v43 = vsel %vm194_vm0, %v3490_v25, %v191_v27  ;;  %v151_v21 = vpop.permute.xlu1 %150 }
 0x136   :  { %v217_v4 = vmul.f32 %v3632_v60, %v196_v43  ;;  %2728 = vmatmul.mubr.msk.bf16.vlgmr.msra.gmra.mrb[0].mxu0 %vm225_vm3, %v3646_v6  ;;  %v218_v20 = vmul.f32 %v3636_v61, %v195_v42  ;;  %v157_v25 = vsel %vm156_vm1, %v151_v21, %v3514_v37  ;;  %v158_v10 = vsel %vm156_vm1, %v3501_v31, %v151_v21 }
 0x137   :  { %723 = vmatpush1.bf16.msra.mxu0 %v711_v33  ;;  %754 = vmatprep.mubr.bf16.mxu0 %v3207_v2  ;;  %v179_v27 = vmul.f32 %v3644_v0, %v158_v10  ;;  %v180_v43 = vmul.f32 %v3653_v17, %v157_v25  ;;  %v958_v37 = vsel %vm956_vm7, %v3588_v35, %v3590_v36 }
 0x138   :  { %v426_v49 = vpop.permute.xlu0 %425  ;;  %v222_v60 = vpack.c.bf16 %v218_v20, %v218_v20  ;;  %v221_v42 = vpack.c.bf16 %v217_v4, %v217_v4  ;;  %2735 = vmatprep.subr.msk.bf16.mxu0 %vm229_vm2, %v842_v24  ;;  %v841_v4 = vpack.c.bf16 %v837_v55, %v837_v55  ;;  %v978_v24 = vmul.f32 %v3665_v26, %v958_v37 }
 0x139   :  { %v430_v31 = vsel %vm429_vm4, %v426_v49, %v3546_v51  ;;  %v184_v23 = vpack.c.bf16 %v180_v43, %v180_v43  ;;  %v183_v33 = vpack.c.bf16 %v179_v27, %v179_v27  ;;  %v3700_v25 = vrot.slane %v3457_v12, %v3508_v34 }
 0x13a   :  { %2717 = vmatprep.subr.msk.bf16.mxu1 %vm229_vm2, %v222_v60  ;;  %v453_v21 = vmul.f32 %v3672_v53, %v430_v31  ;;  %v237_v20 = vsel %vm229_vm2, %v221_v42, 0  ;;  %v3705_v60 = vld [vmem:[#allocation7 + $0x10] sm:$0xf]  ;;  %v3709_v55 = vrot.slane %v3409_v8, %v3626_v56  ;;  %v982_v27 = vpack.c.bf16 %v978_v24, %v978_v24  ;;  %v566_v42 = vpop.permute.xlu1 %565  ;;  %v3748_v24 = vld [vmem:[#allocation7 + $0x14] sm:$0xf] }
 0x13b   :  { %284 = vmatpush1.bf16.msra.mxu1 %v237_v20  ;;  %v334_v51 = vsel %vm229_vm2, %v183_v33, 0  ;;  %v431_v43 = vsel %vm429_vm4, %v3529_v46, %v426_v49  ;;  %v851_v34 = vsel %vm229_vm2, %v841_v4, 0  ;;  %v3727_v46 = vrot.slane %v3459_v13, %v3539_v48 }
 0x13c   :  { %2721 = vmatprep.subr.msk.bf16.mxu1 %vm229_vm2, %v184_v23  ;;  %v457_v10 = vpack.c.bf16 %v453_v21, %v453_v21  ;;  %v452_v8 = vmul.f32 %v3700_v25, %v431_v43  ;;  %v1098_v37 = vsel %vm1096_vm8, %v3603_v45, %v3612_v50  ;;  %v3743_v20 = vrot.slane %v3457_v12, %v3539_v48  ;;  %v3767_v43 = vld [vmem:[#allocation5 + $0x28] ss:$0 sm:$0xff] }
 0x13d   :  { %v1118_v21 = vmul.f32 %v3421_v11, %v1098_v37  ;;  %v1099_v48 = vsel %vm1096_vm8, %v3597_v41, %v3603_v45  ;;  %v1238_v45 = vsel %vm1236_vm9, %v3621_v54, %v3628_v58 }
 0x13e   :  { %2718 = vmatmul.mubr.msk.bf16.vlgmr.msra.gmra.mrb[0].mxu1 %vm225_vm3, %v3521_v40  ;;  %v959_v40 = vsel %vm956_vm7, %v3586_v30, %v3588_v35  ;;  %v570_v35 = vsel %vm569_vm5, %v566_v42, %v3565_v62  ;;  %v456_v31 = vpack.c.bf16 %v452_v8, %v452_v8  ;;  %v704_v8 = vpack.c.bf16 %v3374_v3, %v3374_v3 }
 0x13f   :  { %381 = vmatpush1.bf16.msra.mxu1 %v334_v51  ;;  %412 = vmatprep.mubr.bf16.mxu1 %v3207_v2  ;;  %v977_v49 = vmul.f32 %v3709_v55, %v959_v40  ;;  %v593_v23 = vmul.f32 %v3727_v46, %v570_v35  ;;  %v571_v51 = vsel %vm569_vm5, %v3558_v59, %v566_v42  ;;  %v3779_v35 = vld [vmem:[#allocation7 + $0x18] sm:$0xf] }
 0x140   :  { %2725 = vmatprep.subr.msk.bf16.mxu1 %vm229_vm2, %v457_v10  ;;  %v470_v62 = vsel %vm229_vm2, %v456_v31, 0  ;;  %v1122_v10 = vpack.c.bf16 %v1118_v21, %v1118_v21  ;;  %v1117_v59 = vmul.f32 %v3414_v9, %v1099_v48  ;;  %v1258_v42 = vmul.f32 %v3767_v43, %v1238_v45 }
 0x141   :  { %v981_v33 = vpack.c.bf16 %v977_v49, %v977_v49  ;;  %v597_v4 = vpack.c.bf16 %v593_v23, %v593_v23  ;;  %v3783_v23 = vld [vmem:[#allocation5 + $0x20] ss:$0 sm:$0xff]  ;;  %v1239_v3 = vsel %vm1236_vm9, %v3618_v52, %v3621_v54  ;;  %v703_v54 = vpack.c.bf16 %v3366_v1, %v3366_v1 }
 0x142   :  { %2732 = vmatmul.mubr.msk.bf16.vlgmr.msra.gmra.mrb[0].mxu0 %vm225_vm3, %v3705_v60  ;;  %v1121_v40 = vpack.c.bf16 %v1117_v59, %v1117_v59  ;;  %v1262_v37 = vpack.c.bf16 %v1258_v42, %v1258_v42  ;;  %v1257_v21 = vmul.f32 %v3783_v23, %v1239_v3  ;;  %v955_v59 = vpop.permute.xlu1 %954 }
 0x143   :  { %863 = vmatpush1.bf16.msra.mxu0 %v851_v34  ;;  %894 = vmatprep.mubr.bf16.mxu0 %v3207_v2 }
 0x144   :  { %2739 = vmatprep.subr.msk.bf16.mxu0 %vm229_vm2, %v982_v27  ;;  %v991_v27 = vsel %vm229_vm2, %v981_v33, 0  ;;  %v1131_v31 = vsel %vm229_vm2, %v1121_v40, 0  ;;  %v815_v33 = vpop.permute.xlu0 %814  ;;  %v3831_v40 = vrot.slane %v3457_v12, %v3626_v56 }
 0x14a   :  { %2722 = vmatmul.mubr.msk.bf16.vlgmr.msra.gmra.mrb[0].mxu1 %vm225_vm3, %v3567_v63  ;;  %v592_v63 = vmul.f32 %v3743_v20, %v571_v51  ;;  %v717_v51 = vsel %vm229_vm2, %v703_v54, 0 }
 0x14b   :  { %517 = vmatpush1.bf16.msra.mxu1 %v470_v62  ;;  %548 = vmatprep.mubr.bf16.mxu1 %v3207_v2 }
 0x14c   :  { %2729 = vmatprep.subr.msk.bf16.mxu1 %vm229_vm2, %v597_v4  ;;  %v596_v34 = vpack.c.bf16 %v592_v63, %v592_v63  ;;  %v820_v4 = vsel %vm816_vm6, %v815_v33, %v3573_v18  ;;  %v1126_v63 = vld [vmem:[#allocation7 + $0x1c] sm:$0xf]  ;;  %v817_v18 = vsel %vm816_vm6, %v3583_v29, %v815_v33  ;;  %v960_v29 = vsel %vm956_vm7, %v955_v59, %v3586_v30  ;;  %v1095_v30 = vpop.permute.xlu0 %1094  ;;  %v1235_v33 = vpop.permute.xlu1 %1234 }
 0x14d   :  { %v1097_v3 = vsel %vm1096_vm8, %v3612_v50, %v1095_v30 }
 0x14e   :  { %2736 = vmatmul.mubr.msk.bf16.vlgmr.msra.gmra.mrb[0].mxu0 %vm225_vm3, %v3748_v24  ;;  %v610_v49 = vsel %vm229_vm2, %v596_v34, 0 }
 0x14f   :  { %1003 = vmatpush1.bf16.msra.mxu0 %v991_v27  ;;  %1034 = vmatprep.mubr.bf16.mxu0 %v3207_v2  ;;  %v3808_v27 = vrot.slane %v3457_v12, %v3595_v39 }
 0x150   :  { %2743 = vmatprep.subr.msk.bf16.mxu0 %vm229_vm2, %v1122_v10  ;;  %v1261_v10 = vpack.c.bf16 %v1257_v21, %v1257_v21  ;;  %v3857_v21 = vld [vmem:[#allocation5 + $0x38] ss:$0 sm:$0xff] }
 0x152   :  { %v1271_v1 = vsel %vm229_vm2, %v1261_v10, 0  ;;  %v3866_v10 = vld [vmem:[#allocation5 + $0x30] ss:$0 sm:$0xff] }
 0x156   :  { %2726 = vmatmul.mubr.msk.bf16.vlgmr.msra.gmra.mrb[0].mxu1 %vm225_vm3, %v3592_v38  ;;  %v3794_v38 = vrot.slane %v3459_v13, %v3595_v39  ;;  %v839_v39 = vmul.f32 %v3808_v27, %v817_v18 }
 0x157   :  { %657 = vmatpush1.bf16.msra.mxu1 %v610_v49  ;;  %688 = vmatprep.mubr.bf16.mxu1 %v3207_v2  ;;  %v957_v49 = vsel %vm956_vm7, %v3590_v36, %v955_v59 }
 0x158   :  { %2733 = vmatprep.subr.msk.bf16.mxu1 %vm229_vm2, %v704_v8  ;;  %v840_v62 = vmul.f32 %v3794_v38, %v820_v4  ;;  %v843_v45 = vpack.c.bf16 %v839_v39, %v839_v39  ;;  %v1266_v8 = vld [vmem:[#allocation7 + $0x20] sm:$0xf]  ;;  %v979_v12 = vmul.f32 %v3831_v40, %v957_v49 }
 0x15a   :  { %2740 = vmatmul.mubr.msk.bf16.vlgmr.msra.gmra.mrb[0].mxu0 %vm225_vm3, %v3779_v35  ;;  %v844_v48 = vpack.c.bf16 %v840_v62, %v840_v62 }
 0x15b   :  { %1143 = vmatpush1.bf16.msra.mxu0 %v1131_v31  ;;  %1174 = vmatprep.mubr.bf16.mxu0 %v3207_v2 }
 0x15c   :  { %2751 = vmatprep.subr.msk.bf16.mxu0 %vm229_vm2, %v1262_v37 }
 0x162   :  { %2730 = vmatmul.mubr.msk.bf16.vlgmr.msra.gmra.mrb[0].mxu1 %vm225_vm3, %v3646_v6  ;;  %v3822_v6 = vrot.slane %v3459_v13, %v3626_v56  ;;  %v857_v13 = vsel %vm229_vm2, %v843_v45, 0  ;;  %v1100_v56 = vsel %vm1096_vm8, %v1095_v30, %v3597_v41  ;;  %v1119_v41 = vmul.f32 %v3462_v14, %v1097_v3 }
 0x163   :  { %764 = vmatpush1.bf16.msra.mxu1 %v717_v51  ;;  %795 = vmatprep.mubr.bf16.mxu1 %v3207_v2  ;;  %v1120_v37 = vmul.f32 %v3465_v15, %v1100_v56  ;;  %v1237_v51 = vsel %vm1236_vm9, %v3628_v58, %v1235_v33 }
 0x164   :  { %2737 = vmatprep.subr.msk.bf16.mxu1 %vm229_vm2, %v844_v48  ;;  %v980_v34 = vmul.f32 %v3822_v6, %v960_v29  ;;  %v1123_v4 = vpack.c.bf16 %v1119_v41, %v1119_v41 }
 0x165   :  { %v1124_v36 = vpack.c.bf16 %v1120_v37, %v1120_v37 }
 0x166   :  { %2744 = vmatmul.mubr.msk.bf16.vlgmr.msra.gmra.mrb[0].mxu0 %vm225_vm3, %v1126_v63  ;;  %v984_v42 = vpack.c.bf16 %v980_v34, %v980_v34  ;;  %v1137_v50 = vsel %vm229_vm2, %v1123_v4, 0 }
 0x167   :  { %1283 = vmatpush1.bf16.msra.mxu0 %v1271_v1  ;;  %1314 = vmatprep.mubr.bf16.mxu0 %v3207_v2 }
 0x16e   :  { %2734 = vmatmul.mubr.msk.bf16.vlgmr.msra.gmra.mrb[0].mxu1 %vm225_vm3, %v3705_v60  ;;  %v983_v60 = vpack.c.bf16 %v979_v12, %v979_v12 }
 0x16f   :  { %904 = vmatpush1.bf16.msra.mxu1 %v857_v13  ;;  %935 = vmatprep.mubr.bf16.mxu1 %v3207_v2 }
 0x170   :  { %2741 = vmatprep.subr.msk.bf16.mxu1 %vm229_vm2, %v984_v42  ;;  %v997_v31 = vsel %vm229_vm2, %v983_v60, 0 }
 0x172   :  { %2752 = vmatmul.mubr.msk.bf16.vlgmr.msra.gmra.mrb[0].mxu0 %vm225_vm3, %v1266_v8 }
 0x173   :  { %1590 = vmatprep.mubr.bf16.mxu0 %v3207_v2 }
 0x17a   :  { %2738 = vmatmul.mubr.msk.bf16.vlgmr.msra.gmra.mrb[0].mxu1 %vm225_vm3, %v3748_v24  ;;  %v1240_v24 = vsel %vm1236_vm9, %v1235_v33, %v3618_v52  ;;  %v1259_v52 = vmul.f32 %v3866_v10, %v1237_v51 }
 0x17b   :  { %1044 = vmatpush1.bf16.msra.mxu1 %v997_v31  ;;  %1075 = vmatprep.mubr.bf16.mxu1 %v3207_v2  ;;  %v1260_v54 = vmul.f32 %v3857_v21, %v1240_v24  ;;  %v1368_v24 = vld [vmem:[#allocation8] sm:$0xff] }
 0x17c   :  { %2745 = vmatprep.subr.msk.bf16.mxu1 %vm229_vm2, %v1124_v36  ;;  %v1263_v48 = vpack.c.bf16 %v1259_v52, %v1259_v52 }
 0x17d   :  { %v1264_v62 = vpack.c.bf16 %v1260_v54, %v1260_v54 }
 0x186   :  { %2742 = vmatmul.mubr.msk.bf16.vlgmr.msra.gmra.mrb[0].mxu1 %vm225_vm3, %v3779_v35  ;;  %v1277_v35 = vsel %vm229_vm2, %v1263_v48, 0 }
 0x187   :  { %1184 = vmatpush1.bf16.msra.mxu1 %v1137_v50  ;;  %1215 = vmatprep.mubr.bf16.mxu1 %v3207_v2 }
 0x188   :  { %2753 = vmatprep.subr.msk.bf16.mxu1 %vm229_vm2, %v1264_v62 }
 0x192   :  { %2746 = vmatmul.mubr.msk.bf16.vlgmr.msra.gmra.mrb[0].mxu1 %vm225_vm3, %v1126_v63 }
 0x193   :  { %1324 = vmatpush1.bf16.msra.mxu1 %v1277_v35  ;;  %1355 = vmatprep.mubr.bf16.mxu1 %v3207_v2 }
 0x19e   :  { %2754 = vmatmul.mubr.msk.bf16.vlgmr.msra.gmra.mrb[0].mxu1 %vm225_vm3, %v1266_v8 }
 0x19f   :  { %1631 = vmatprep.mubr.bf16.mxu1 %v3207_v2 }
 0x245   :  { %v1316_v58 = vpop.f32.mrb[0].mxu0 }
 0x246   :  { %v1318_v18 = vpop.f32.mrb[1].mxu0 }
 0x247   :  { %v1320_v1 = vpop.f32.mrb[2].mxu0  ;;  %v1370_v59 = vadd.f32 %v1318_v18, %v1316_v58 }
 0x248   :  { %v1321_v39 = vpop.f32.mrb[3].mxu0 }
 0x249   :  { %1371 = vadd.xlane.f32.xlu0 %v1370_v59 }
 0x271   :  { %v1357_v29 = vpop.f32.mrb[0].mxu1 }
 0x272   :  { %v1359_v45 = vpop.f32.mrb[1].mxu1 }
 0x273   :  { %v1406_v34 = vadd.f32 %v1359_v45, %v1357_v29  ;;  %v1361_v42 = vpop.f32.mrb[2].mxu1 }
 0x274   :  { %v1362_v63 = vpop.f32.mrb[3].mxu1 }
 0x275   :  { %1407 = vadd.xlane.f32.xlu0 %v1406_v34 }
 0x2d6   :  { %v1372_v13 = vpop.xlane.xlu0 %1371 }
 0x2d7   :  { %v1373_v49 = vrot.slane %v1372_v13, 4 }
 0x2d9   :  { %v1374_v30 = vadd.f32 %v1373_v49, %v1372_v13 }
 0x2db   :  { %v1375_v12 = vrot.slane %v1374_v30, 2 }
 0x2dd   :  { %v1376_v56 = vadd.f32 %v1375_v12, %v1374_v30 }
 0x2df   :  { %v1377_v8 = vrot.slane %v1376_v56, 1 }
 0x2e1   :  { %v1378_v60 = vadd.f32 %v1377_v8, %v1376_v56 }
 0x2e3   :  { %2919 = vpush %v1378_v60  ;;  %v1369_v60 = vld [vmem:[#allocation10] sm:$0xff] }
 0x302   :  { %v1408_v35 = vpop.xlane.xlu0 %1407 }
 0x303   :  { %v1409_v1 = vrot.slane %v1408_v35, 4 }
 0x305   :  { %v1410_v59 = vadd.f32 %v1409_v1, %v1408_v35 }
 0x314   :  { %s2920_s30 = spop %2919 }
 0x315   :  { %s1382_s9 = smul.f32 0.00048828125, %s2920_s30 }
 0x317   :  { %v1383_v37 = vstv %s1382_s9 }
 0x318   :  { %v1384_v36 = vsub.f32 %v1316_v58, %v1383_v37  ;;  %v1385_v31 = vsub.f32 %v1318_v18, %v1383_v37  ;;  %v1411_v58 = vrot.slane %v1410_v59, 2 }
 0x31a   :  { %v1386_v3 = vmul.f32 %v1384_v36, %v1384_v36  ;;  %v1387_v33 = vmul.f32 %v1385_v31, %v1385_v31  ;;  %v1412_v39 = vadd.f32 %v1411_v58, %v1410_v59 }
 0x31c   :  { %v1388_v41 = vadd.f32 %v1387_v33, %v1386_v3  ;;  %v1413_v34 = vrot.slane %v1412_v39, 1 }
 0x31e   :  { %1389 = vadd.xlane.f32.xlu1 %v1388_v41  ;;  %v1414_v63 = vadd.f32 %v1413_v34, %v1412_v39 }
 0x32f   :  { %1460 = vperm.xlu1 %2965, %v1368_v24  }
 0x3ab   :  { %v1390_v4 = vpop.xlane.xlu1 %1389 }
 0x3ac   :  { %v1391_v54 = vrot.slane %v1390_v4, 4 }
 0x3ae   :  { %v1392_v62 = vadd.f32 %v1391_v54, %v1390_v4 }
 0x3af   :  { %v1461_v3 = vpop.permute.xlu1 %1460 }
 0x3b0   :  { %v1393_v50 = vrot.slane %v1392_v62, 2 }
 0x3b2   :  { %v1394_v51 = vadd.f32 %v1393_v50, %v1392_v62 }
 0x3b4   :  { %v1395_v52 = vrot.slane %v1394_v51, 1 }
 0x3b6   :  { %v1396_v48 = vadd.f32 %v1395_v52, %v1394_v51 }
 0x3b8   :  { %2921 = vpush %v1396_v48 }
 0x3e9   :  { %s2922_s10 = spop %2921 }
 0x3ea   :  { %s1400_s12 = smul.f32 0.00048828125, %s2922_s10 }
 0x3ec   :  { %s1401_s14 = sadd.f32 1e-05, %s1400_s12 }
 0x3ee   :  { %v1402_v18 = vstv %s1401_s14 }
 0x3ef   :  { %2969 = vrsqrt.f32 %v1402_v18 }
 0x3f9   :  { %v2970_v42 = vpop.eup %2969 }
 0x3fa   :  { %2923 = vpush %v2970_v42 }
 0x3fb   :  { %2925 = vpush %v1414_v63 }
 0x42b   :  { %s2924_s15 = spop %2923 }
 0x42c   :  { %s2926_s16 = spop %2925  ;;  %v1405_v37 = vstv %s2924_s15 }
 0x42d   :  { %s1418_s17 = smul.f32 0.00048828125, %s2926_s16  ;;  %v1463_v24 = vmul.f32 %v1461_v3, %v1405_v37 }
 0x42f   :  { %v1419_v13 = vstv %s1418_s17  ;;  %v1465_v62 = vmul.f32 %v1463_v24, %v1384_v36  ;;  %v1466_v50 = vmul.f32 %v1463_v24, %v1385_v31 }
 0x430   :  { %v1420_v49 = vsub.f32 %v1357_v29, %v1419_v13  ;;  %v1421_v30 = vsub.f32 %v1359_v45, %v1419_v13 }
 0x432   :  { %v1422_v12 = vmul.f32 %v1420_v49, %v1420_v49  ;;  %v1423_v56 = vmul.f32 %v1421_v30, %v1421_v30 }
 0x434   :  { %v1424_v8 = vadd.f32 %v1423_v56, %v1422_v12 }
 0x436   :  { %1425 = vadd.xlane.f32.xlu0 %v1424_v8 }
 0x44c   :  { %1471 = vperm.xlu0 %2966, %v1369_v60  }
 0x4c3   :  { %v1426_v33 = vpop.xlane.xlu0 %1425 }
 0x4c4   :  { %v1427_v41 = vrot.slane %v1426_v33, 4 }
 0x4c6   :  { %v1428_v4 = vadd.f32 %v1427_v41, %v1426_v33 }
 0x4c8   :  { %v1429_v54 = vrot.slane %v1428_v4, 2 }
 0x4ca   :  { %v1430_v51 = vadd.f32 %v1429_v54, %v1428_v4 }
 0x4cb   :  { %v1472_v52 = vpop.permute.xlu0 %1471 }
 0x4cc   :  { %v1474_v48 = vadd.f32 %v1472_v52, %v1465_v62  ;;  %v1475_v29 = vadd.f32 %v1472_v52, %v1466_v50  ;;  %v1431_v45 = vrot.slane %v1430_v51, 1 }
 0x4ce   :  { %v1482_v35 = vmul.f32 0.70710677, %v1474_v48  ;;  %v1483_v1 = vmul.f32 0.70710677, %v1475_v29  ;;  %v1432_v59 = vadd.f32 %v1431_v45, %v1430_v51  ;;  %v1478_v39 = vmul.f32 0.5, %v1474_v48 }
 0x4cf   :  { %v1479_v36 = vmul.f32 0.5, %v1475_v29 }
 0x4d0   :  { %2971 = verf.f32 %v1482_v35  ;;  %2927 = vpush %v1432_v59 }
 0x4d1   :  { %2973 = verf.f32 %v1483_v1 }
 0x4da   :  { %v2972_v58 = vpop.eup %2971 }
 0x4db   :  { %v2974_v18 = vpop.eup %2973  ;;  %v1490_v34 = vadd.f32 1.0, %v2972_v58 }
 0x4dc   :  { %v1491_v42 = vadd.f32 1.0, %v2974_v18 }
 0x4dd   :  { %v3879_v63 = vmul.f32 %v1490_v34, %v1478_v39 }
 0x4de   :  { %v3883_v31 = vmul.f32 %v1491_v42, %v1479_v36 }
 0x4df   :  { %1519 = vrot.lane.b32.xlu1 %v3879_v63, %s3208_s7 }
 0x4e3   :  { %1521 = vrot.lane.b32.xlu1 %v3883_v31, %s3208_s7 }
 0x501   :  { %s2928_s18 = spop %2927 }
 0x502   :  { %s1436_s4 = smul.f32 0.00048828125, %s2928_s18 }
 0x504   :  { %s1437_s13 = sadd.f32 1e-05, %s1436_s4 }
 0x506   :  { %v1438_v13 = vstv %s1437_s13 }
 0x507   :  { %2975 = vrsqrt.f32 %v1438_v13  ;;  %v3966_v13 = vld [vmem:[#allocation11 + $0x4] sm:$0xf] }
 0x511   :  { %v2976_v12 = vpop.eup %2975 }
 0x512   :  { %2929 = vpush %v2976_v12 }
 0x543   :  { %s2930_s3 = spop %2929 }
 0x544   :  { %v1441_v56 = vstv %s2930_s3 }
 0x545   :  { %v1464_v8 = vmul.f32 %v1461_v3, %v1441_v56 }
 0x547   :  { %v1468_v60 = vmul.f32 %v1464_v8, %v1421_v30  ;;  %v1467_v33 = vmul.f32 %v1464_v8, %v1420_v49 }
 0x549   :  { %v1477_v37 = vadd.f32 %v1472_v52, %v1468_v60  ;;  %v1476_v24 = vadd.f32 %v1472_v52, %v1467_v33 }
 0x54b   :  { %v1485_v41 = vmul.f32 0.70710677, %v1477_v37  ;;  %v1484_v54 = vmul.f32 0.70710677, %v1476_v24  ;;  %v1481_v3 = vmul.f32 0.5, %v1477_v37  ;;  %v1480_v45 = vmul.f32 0.5, %v1476_v24 }
 0x54d   :  { %2977 = verf.f32 %v1485_v41 }
 0x54e   :  { %2979 = verf.f32 %v1484_v54 }
 0x551   :  { %v1520_v4 = vpop.permute.xlu1 %1519 }
 0x555   :  { %v3887_v62 = vpop.permute.xlu1 %1521 }
 0x556   :  { %v1529_v50 = vsel %vm194_vm0, %v1520_v4, %v3887_v62 }
 0x557   :  { %v1532_v51 = vmul.f32 %v1529_v50, %v3484_v22  ;;  %v2978_v48 = vpop.eup %2977 }
 0x558   :  { %v1493_v30 = vadd.f32 1.0, %v2978_v48  ;;  %v2980_v52 = vpop.eup %2979 }
 0x559   :  { %v1536_v29 = vpack.c.bf16 %v1532_v51, %v1532_v51  ;;  %v1492_v22 = vadd.f32 1.0, %v2980_v52 }
 0x55a   :  { %v3894_v49 = vmul.f32 %v1493_v30, %v1481_v3 }
 0x55b   :  { %2755 = vmatprep.subr.msk.bf16.mxu0 %vm1545_vm10, %v1536_v29  ;;  %v3908_v35 = vmul.f32 %v1492_v22, %v1480_v45  ;;  %v3995_v29 = vld [vmem:[#allocation11] sm:$0xf] }
 0x55c   :  { %1743 = vrot.lane.b32.xlu0 %v3894_v49, %s3210_s1  ;;  %1525 = vrot.lane.b32.xlu1 %v3894_v49, %s3208_s7 }
 0x560   :  { %1862 = vrot.lane.b32.xlu0 %v3883_v31, %s3211_s28  ;;  %1498 = vrot.lane.b32.xlu1 %v3879_v63, %s3209_s29 }
 0x564   :  { %2090 = vrot.lane.b32.xlu0 %v3879_v63, %s3212_s2  ;;  %1500 = vrot.lane.b32.xlu1 %v3883_v31, %s3209_s29 }
 0x568   :  { %2094 = vrot.lane.b32.xlu0 %v3908_v35, %s3212_s2  ;;  %1504 = vrot.lane.b32.xlu1 %v3894_v49, %s3209_s29 }
 0x56c   :  { %2215 = vrot.lane.b32.xlu0 %v3883_v31, %s3213_s19  ;;  %1737 = vrot.lane.b32.xlu1 %v3879_v63, %s3210_s1 }
 0x570   :  { %2336 = vrot.lane.b32.xlu0 %v3879_v63, %s3214_s20  ;;  %1739 = vrot.lane.b32.xlu1 %v3883_v31, %s3210_s1 }
 0x574   :  { %2340 = vrot.lane.b32.xlu0 %v3908_v35, %s3214_s20  ;;  %1860 = vrot.lane.b32.xlu1 %v3879_v63, %s3211_s28 }
 0x578   :  { %2461 = vrot.lane.b32.xlu0 %v3883_v31, %s3215_s5  ;;  %1866 = vrot.lane.b32.xlu1 %v3894_v49, %s3211_s28 }
 0x57c   :  { %1523 = vrot.lane.b32.xlu0 %v3908_v35, %s3208_s7  ;;  %2092 = vrot.lane.b32.xlu1 %v3883_v31, %s3212_s2 }
 0x580   :  { %1741 = vrot.lane.b32.xlu0 %v3908_v35, %s3210_s1  ;;  %2213 = vrot.lane.b32.xlu1 %v3879_v63, %s3213_s19  ;;  %s3216_s1 = smov [#allocation16]  }
 0x584   :  { %2096 = vrot.lane.b32.xlu0 %v3894_v49, %s3212_s2  ;;  %2217 = vrot.lane.b32.xlu1 %v3908_v35, %s3213_s19 }
 0x588   :  { %2342 = vrot.lane.b32.xlu0 %v3894_v49, %s3214_s20  ;;  %2338 = vrot.lane.b32.xlu1 %v3883_v31, %s3214_s20 }
 0x58c   :  { %2459 = vrot.lane.b32.xlu1 %v3879_v63, %s3215_s5 }
 0x590   :  { %2463 = vrot.lane.b32.xlu1 %v3908_v35, %s3215_s5 }
 0x594   :  { %1502 = vrot.lane.b32.xlu1 %v3908_v35, %s3209_s29 }
 0x598   :  { %1864 = vrot.lane.b32.xlu1 %v3908_v35, %s3211_s28  ;;  %s2702_s28 = sshll.u32 %s3216_s1, 4  ;;  %s2703_s28 = int_to_ptr.vmem [resolvable:$true] %s2702_s28 }
 0x599   :  { %s3161_s2 = scalar_lea.vmem %s2703_s28, 512  ;;  %p3166_p9 = scmp.lt.s32.totalorder %s2703_s28, %s2703_s28 }
 0x59a   :  { %p3162_p8 = scmp.ne.s32.totalorder %s2703_s28, %s3161_s2  ;;  %p3167_p10 = scmp.lt.s32.totalorder %s3161_s2, %s3161_s2 }
 0x59c   :  { %2219 = vrot.lane.b32.xlu1 %v3894_v49, %s3213_s19  ;;  %p3168_p11 = por %p3167_p10, %p3166_p9 }
 0x59e   :  { %p3169_p12 = pnand %p3168_p11, %p3162_p8 }
 0x5a0   :  { %2465 = vrot.lane.b32.xlu1 %v3894_v49, %s3215_s5 }
 0x5ce   :  { %v3958_v1 = vpop.permute.xlu0 %1743  ;;  %v1526_v59 = vpop.permute.xlu1 %1525 }
 0x5cf   :  { %v1530_v58 = vsel %vm194_vm0, %v1526_v59, %v1520_v4 }
 0x5d0   :  { %v1531_v18 = vmul.f32 %v1530_v58, %v3475_v19 }
 0x5d2   :  { %v1535_v39 = vpack.c.bf16 %v1531_v18, %v1531_v18  ;;  %v3963_v34 = vpop.permute.xlu0 %1862  ;;  %v1499_v42 = vpop.permute.xlu1 %1498 }
 0x5d4   :  { %v1547_v36 = vsel %vm1545_vm10, %v1535_v39, 0 }
 0x5d5   :  { %1559 = vmatpush1.bf16.msra.mxu0 %v1547_v36 }
 0x5d6   :  { %v3968_v12 = vpop.permute.xlu0 %2090  ;;  %v3970_v56 = vpop.permute.xlu1 %1500 }
 0x5d7   :  { %v1508_v8 = vsel %vm156_vm1, %v1499_v42, %v3970_v56 }
 0x5d8   :  { %v1511_v19 = vmul.f32 %v1508_v8, %v3498_v28  ;;  %2756 = vmatmul.mubr.msk.bf16.vlgmr.msra.gmra.mrb[4].mxu0 %vm1541_vm11, %v3966_v13 }
 0x5d9   :  { %1687 = vmatprep.mubr.bf16.mxu0 %v3207_v2 }
 0x5da   :  { %v1515_v60 = vpack.c.bf16 %v1511_v19, %v1511_v19  ;;  %v3979_v37 = vpop.permute.xlu0 %2094  ;;  %v3981_v33 = vpop.permute.xlu1 %1504 }
 0x5db   :  { %v1509_v41 = vsel %vm156_vm1, %v3981_v33, %v1499_v42 }
 0x5dc   :  { %v1510_v24 = vmul.f32 %v1509_v41, %v3505_v32  ;;  %2759 = vmatprep.subr.msk.bf16.mxu0 %vm1545_vm10, %v1515_v60  ;;  %v4025_v41 = vld [vmem:[#allocation11 + $0x8] sm:$0xf] }
 0x5de   :  { %v1514_v4 = vpack.c.bf16 %v1510_v24, %v1510_v24  ;;  %v3988_v28 = vpop.permute.xlu0 %2215  ;;  %v1738_v54 = vpop.permute.xlu1 %1737 }
 0x5df   :  { %v1748_v50 = vsel %vm429_vm4, %v3958_v1, %v1738_v54 }
 0x5e0   :  { %v1749_v51 = vmul.f32 %v1748_v50, %v3535_v47  ;;  %v1644_v48 = vsel %vm1545_vm10, %v1514_v4, 0 }
 0x5e1   :  { %1656 = vmatpush1.bf16.msra.mxu0 %v1644_v48 }
 0x5e2   :  { %v3997_v3 = vpop.permute.xlu0 %2336  ;;  %v3999_v32 = vpop.permute.xlu1 %1739  ;;  %v1753_v52 = vpack.c.bf16 %v1749_v51, %v1749_v51  ;;  %v4242_v51 = vld [vmem:[#allocation24_spill] sm:$0xff] }
 0x5e3   :  { %v1747_v30 = vsel %vm429_vm4, %v1738_v54, %v3999_v32 }
 0x5e4   :  { %v1750_v22 = vmul.f32 %v1747_v30, %v3527_v44  ;;  %2760 = vmatmul.mubr.msk.bf16.vlgmr.msra.gmra.mrb[4].mxu0 %vm1541_vm11, %v3995_v29  ;;  %v1763_v42 = vsel %vm1545_vm10, %v1753_v52, 0  ;;  %v1984_v52 = vpack.c.bf16 %v3883_v31, %v3883_v31  ;;  %v4243_v31 = vld [vmem:[#allocation23_spill] sm:$0xff] }
 0x5e5   :  { %1806 = vmatprep.mubr.bf16.mxu0 %v3207_v2 }
 0x5e6   :  { %v1754_v47 = vpack.c.bf16 %v1750_v22, %v1750_v22  ;;  %v4008_v45 = vpop.permute.xlu0 %2340  ;;  %v1861_v58 = vpop.permute.xlu1 %1860 }
 0x5e7   :  { %v1870_v18 = vsel %vm569_vm5, %v1861_v58, %v3963_v34 }
 0x5e8   :  { %v1873_v39 = vmul.f32 %v1870_v18, %v3556_v57  ;;  %2763 = vmatprep.subr.msk.bf16.mxu0 %vm1545_vm10, %v1754_v47 }
 0x5e9   :  { %1775 = vmatpush1.bf16.msra.mxu0 %v1763_v42  ;;  %v4055_v42 = vld [vmem:[#allocation11 + $0xc] sm:$0xf] }
 0x5ea   :  { %v1877_v44 = vpack.c.bf16 %v1873_v39, %v1873_v39  ;;  %v4016_v36 = vpop.permute.xlu0 %2461  ;;  %v4018_v8 = vpop.permute.xlu1 %1866  ;;  %v1983_v39 = vpack.c.bf16 %v3879_v63, %v3879_v63 }
 0x5eb   :  { %v1871_v19 = vsel %vm569_vm5, %v4018_v8, %v1861_v58 }
 0x5ec   :  { %v1872_v60 = vmul.f32 %v1871_v19, %v3571_v7  ;;  %2767 = vmatprep.subr.msk.bf16.mxu0 %vm1545_vm10, %v1877_v44 }
 0x5ee   :  { %v1876_v57 = vpack.c.bf16 %v1872_v60, %v1872_v60  ;;  %v1524_v24 = vpop.permute.xlu0 %1523  ;;  %v2093_v4 = vpop.permute.xlu1 %2092  ;;  %v1993_v60 = vsel %vm1545_vm10, %v1983_v39, 0 }
 0x5ef   :  { %v1527_v54 = vsel %vm194_vm0, %v1524_v24, %v1526_v59  ;;  %v1528_v50 = vsel %vm194_vm0, %v3887_v62, %v1524_v24  ;;  %v2099_v62 = vsel %vm816_vm6, %v2093_v4, %v3979_v37 }
 0x5f0   :  { %v1533_v48 = vmul.f32 %v1528_v50, %v4242_v51  ;;  %v1534_v30 = vmul.f32 %v1527_v54, %v3636_v61  ;;  %2764 = vmatmul.mubr.msk.bf16.vlgmr.msra.gmra.mrb[4].mxu0 %vm1541_vm11, %v4025_v41  ;;  %v1886_v7 = vsel %vm1545_vm10, %v1876_v57, 0  ;;  %v2103_v18 = vmul.f32 %v2099_v62, %v4243_v31 }
 0x5f1   :  { %1929 = vmatprep.mubr.bf16.mxu0 %v3207_v2  ;;  %1898 = vmatpush1.bf16.msra.mxu0 %v1886_v7  ;;  %v2100_v57 = vsel %vm816_vm6, %v3968_v12, %v2093_v4 }
 0x5f2   :  { %v1537_v22 = vpack.c.bf16 %v1533_v48, %v1533_v48  ;;  %v1538_v59 = vpack.c.bf16 %v1534_v30, %v1534_v30  ;;  %v4040_v47 = vpop.permute.xlu1 %2213  ;;  %2771 = vmatprep.subr.msk.bf16.mxu0 %vm1545_vm10, %v1984_v52  ;;  %v2107_v19 = vpack.c.bf16 %v2103_v18, %v2103_v18  ;;  %v1742_v24 = vpop.permute.xlu0 %1741 }
 0x5f3   :  { %v1745_v4 = vsel %vm429_vm4, %v1742_v24, %v3958_v1  ;;  %v1746_v48 = vsel %vm429_vm4, %v3999_v32, %v1742_v24  ;;  %v2223_v7 = vsel %vm956_vm7, %v4040_v47, %v3988_v28 }
 0x5f4   :  { %2757 = vmatprep.subr.msk.bf16.mxu1 %vm1545_vm10, %v1538_v59  ;;  %v1553_v61 = vsel %vm1545_vm10, %v1537_v22, 0  ;;  %v1751_v22 = vmul.f32 %v1746_v48, %v3700_v25  ;;  %v1752_v59 = vmul.f32 %v1745_v4, %v3672_v53 }
 0x5f5   :  { %1600 = vmatpush1.bf16.msra.mxu1 %v1553_v61 }
 0x5f6   :  { %v4048_v58 = vpop.permute.xlu1 %2217  ;;  %v1756_v31 = vpack.c.bf16 %v1752_v59, %v1752_v59 }
 0x5f7   :  { %v2222_v54 = vsel %vm956_vm7, %v3988_v28, %v4048_v58 }
 0x5f8   :  { %2758 = vmatmul.mubr.msk.bf16.vlgmr.msra.gmra.mrb[4].mxu1 %vm1541_vm11, %v3966_v13  ;;  %v2102_v13 = vmul.f32 %v2100_v57, %v3640_v5  ;;  %v2226_v30 = vmul.f32 %v2222_v54, %v3665_v26  ;;  %v4082_v5 = vld [vmem:[#allocation11 + $0x10] sm:$0xf] }
 0x5f9   :  { %1728 = vmatprep.mubr.bf16.mxu1 %v3207_v2 }
 0x5fa   :  { %v2339_v44 = vpop.permute.xlu1 %2338  ;;  %v2106_v51 = vpack.c.bf16 %v2102_v13, %v2102_v13  ;;  %v2230_v32 = vpack.c.bf16 %v2226_v30, %v2226_v30  ;;  %v4121_v13 = vld [vmem:[#allocation11 + $0x14] sm:$0xf]  ;;  %v1986_v30 = vpack.c.bf16 %v3894_v49, %v3894_v49 }
 0x5fb   :  { %v2346_v54 = vsel %vm1096_vm8, %v3997_v3, %v2339_v44 }
 0x5fc   :  { %2768 = vmatmul.mubr.msk.bf16.vlgmr.msra.gmra.mrb[4].mxu0 %vm1541_vm11, %v4055_v42  ;;  %v2116_v25 = vsel %vm1545_vm10, %v2106_v51, 0 }
 0x5fd   :  { %2005 = vmatpush1.bf16.msra.mxu0 %v1993_v60  ;;  %2036 = vmatprep.mubr.bf16.mxu0 %v3207_v2 }
 0x5fe   :  { %2775 = vmatprep.subr.msk.bf16.mxu0 %vm1545_vm10, %v2107_v19  ;;  %v4066_v63 = vpop.permute.xlu1 %2459  ;;  %v2345_v19 = vsel %vm1096_vm8, %v2339_v44, %v4008_v45 }
 0x5ff   :  { %v2349_v60 = vmul.f32 %v2345_v19, %v3421_v11  ;;  %v2469_v49 = vsel %vm1236_vm9, %v4066_v63, %v4016_v36 }
 0x600   :  { %v2471_v59 = vmul.f32 %v3783_v23, %v2469_v49 }
 0x601   :  { %v2353_v24 = vpack.c.bf16 %v2349_v60, %v2349_v60 }
 0x602   :  { %v4073_v50 = vpop.permute.xlu1 %2463 }
 0x606   :  { %v1503_v52 = vpop.permute.xlu1 %1502 }
 0x607   :  { %v1506_v1 = vsel %vm156_vm1, %v1503_v52, %v3981_v33  ;;  %v1507_v26 = vsel %vm156_vm1, %v3970_v56, %v1503_v52  ;;  %v2225_v56 = vmul.f32 %v2223_v7, %v3709_v55  ;;  %v2234_v7 = vld [vmem:[#allocation11 + $0x18] sm:$0xf] }
 0x608   :  { %v1512_v61 = vmul.f32 %v1507_v26, %v3644_v0  ;;  %v1513_v62 = vmul.f32 %v1506_v1, %v3653_v17  ;;  %2772 = vmatmul.mubr.msk.bf16.vlgmr.msra.gmra.mrb[4].mxu0 %vm1541_vm11, %v4082_v5  ;;  %v1755_v17 = vpack.c.bf16 %v1751_v22, %v1751_v22  ;;  %v1985_v1 = vpack.c.bf16 %v3908_v35, %v3908_v35 }
 0x609   :  { %2128 = vmatpush1.bf16.msra.mxu0 %v2116_v25  ;;  %2159 = vmatprep.mubr.bf16.mxu0 %v3207_v2  ;;  %v2229_v55 = vpack.c.bf16 %v2225_v56, %v2225_v56 }
 0x60a   :  { %v1516_v53 = vpack.c.bf16 %v1512_v61, %v1512_v61  ;;  %v1517_v28 = vpack.c.bf16 %v1513_v62, %v1513_v62  ;;  %2779 = vmatprep.subr.msk.bf16.mxu0 %vm1545_vm10, %v2230_v32  ;;  %v1865_v33 = vpop.permute.xlu1 %1864  ;;  %v2475_v32 = vpack.c.bf16 %v2471_v59, %v2471_v59  ;;  %v2357_v61 = vld [vmem:[#allocation11 + $0x1c] sm:$0xf] }
 0x60b   :  { %v1868_v0 = vsel %vm569_vm5, %v1865_v33, %v4018_v8  ;;  %v1869_v8 = vsel %vm569_vm5, %v3963_v34, %v1865_v33  ;;  %v2348_v34 = vmul.f32 %v2346_v54, %v3414_v9  ;;  %v2097_v9 = vpop.permute.xlu0 %2096 }
 0x60c   :  { %v1875_v18 = vmul.f32 %v1868_v0, %v3727_v46  ;;  %2761 = vmatprep.subr.msk.bf16.mxu1 %vm1545_vm10, %v1517_v28  ;;  %v1650_v39 = vsel %vm1545_vm10, %v1516_v53, 0  ;;  %v1769_v46 = vsel %vm1545_vm10, %v1755_v17, 0  ;;  %v1874_v11 = vmul.f32 %v1869_v8, %v3743_v20  ;;  %v2480_v28 = vld [vmem:[#allocation11 + $0x20] sm:$0xf] }
 0x60d   :  { %1697 = vmatpush1.bf16.msra.mxu1 %v1650_v39  ;;  %v2468_v20 = vsel %vm1236_vm9, %v4016_v36, %v4073_v50  ;;  %v2352_v4 = vpack.c.bf16 %v2348_v34, %v2348_v34  ;;  %v2098_v36 = vsel %vm816_vm6, %v3979_v37, %v2097_v9  ;;  %v2485_v35 = vsel %vm1545_vm10, %v2475_v32, 0 }
 0x60e   :  { %2765 = vmatprep.subr.msk.bf16.mxu1 %vm1545_vm10, %v1756_v31  ;;  %v1879_v57 = vpack.c.bf16 %v1875_v18, %v1875_v18  ;;  %v1878_v51 = vpack.c.bf16 %v1874_v11, %v1874_v11  ;;  %v2472_v48 = vmul.f32 %v3767_v43, %v2468_v20  ;;  %v2104_v23 = vmul.f32 %v2098_v36, %v3808_v27 }
 0x60f   :  { %v2362_v43 = vsel %vm1545_vm10, %v2352_v4, 0 }
 0x610   :  { %2762 = vmatmul.mubr.msk.bf16.vlgmr.msra.gmra.mrb[4].mxu1 %vm1541_vm11, %v3995_v29  ;;  %v2239_v29 = vsel %vm1545_vm10, %v2229_v55, 0  ;;  %v1892_v44 = vsel %vm1545_vm10, %v1878_v51, 0  ;;  %v2476_v52 = vpack.c.bf16 %v2472_v48, %v2472_v48  ;;  %v2108_v37 = vpack.c.bf16 %v2104_v23, %v2104_v23 }
 0x611   :  { %1816 = vmatpush1.bf16.msra.mxu1 %v1769_v46  ;;  %1847 = vmatprep.mubr.bf16.mxu1 %v3207_v2 }
 0x612   :  { %2769 = vmatprep.subr.msk.bf16.mxu1 %vm1545_vm10, %v1879_v57  ;;  %v2122_v27 = vsel %vm1545_vm10, %v2108_v37, 0 }
 0x614   :  { %2776 = vmatmul.mubr.msk.bf16.vlgmr.msra.gmra.mrb[4].mxu0 %vm1541_vm11, %v4121_v13 }
 0x615   :  { %2251 = vmatpush1.bf16.msra.mxu0 %v2239_v29  ;;  %2282 = vmatprep.mubr.bf16.mxu0 %v3207_v2 }
 0x616   :  { %2783 = vmatprep.subr.msk.bf16.mxu0 %vm1545_vm10, %v2353_v24 }
 0x61c   :  { %2766 = vmatmul.mubr.msk.bf16.vlgmr.msra.gmra.mrb[4].mxu1 %vm1541_vm11, %v4025_v41  ;;  %v2101_v41 = vsel %vm816_vm6, %v2097_v9, %v3968_v12  ;;  %v1999_v12 = vsel %vm1545_vm10, %v1985_v1, 0 }
 0x61d   :  { %1939 = vmatpush1.bf16.msra.mxu1 %v1892_v44  ;;  %1970 = vmatprep.mubr.bf16.mxu1 %v3207_v2  ;;  %v2105_v22 = vmul.f32 %v2101_v41, %v3794_v38  ;;  %v2220_v38 = vpop.permute.xlu1 %2219 }
 0x61e   :  { %2773 = vmatprep.subr.msk.bf16.mxu1 %vm1545_vm10, %v1986_v30  ;;  %v2221_v53 = vsel %vm956_vm7, %v4048_v58, %v2220_v38 }
 0x61f   :  { %v2109_v26 = vpack.c.bf16 %v2105_v22, %v2105_v22  ;;  %v2227_v33 = vmul.f32 %v2221_v53, %v3831_v40 }
 0x620   :  { %2780 = vmatmul.mubr.msk.bf16.vlgmr.msra.gmra.mrb[4].mxu0 %vm1541_vm11, %v2234_v7 }
 0x621   :  { %2374 = vmatpush1.bf16.msra.mxu0 %v2362_v43  ;;  %2405 = vmatprep.mubr.bf16.mxu0 %v3207_v2  ;;  %v2231_v56 = vpack.c.bf16 %v2227_v33, %v2227_v33  ;;  %v2466_v40 = vpop.permute.xlu1 %2465  ;;  %v2583_v33 = vld [vmem:[#allocation14] sm:$0xff] }
 0x622   :  { %2787 = vmatprep.subr.msk.bf16.mxu0 %vm1545_vm10, %v2476_v52  ;;  %v2467_v19 = vsel %vm1236_vm9, %v4073_v50, %v2466_v40  ;;  %v2582_v52 = vld [vmem:[#allocation13] sm:$0xff] }
 0x623   :  { %v2245_v58 = vsel %vm1545_vm10, %v2231_v56, 0 }
 0x628   :  { %2770 = vmatmul.mubr.msk.bf16.vlgmr.msra.gmra.mrb[4].mxu1 %vm1541_vm11, %v4055_v42  ;;  %v2224_v42 = vsel %vm956_vm7, %v2220_v38, %v4040_v47  ;;  %v2343_v47 = vpop.permute.xlu0 %2342 }
 0x629   :  { %2046 = vmatpush1.bf16.msra.mxu1 %v1999_v12  ;;  %2077 = vmatprep.mubr.bf16.mxu1 %v3207_v2  ;;  %v2228_v62 = vmul.f32 %v2224_v42, %v3822_v6  ;;  %v2347_v6 = vsel %vm1096_vm8, %v2343_v47, %v3997_v3  ;;  %v2344_v17 = vsel %vm1096_vm8, %v4008_v45, %v2343_v47 }
 0x62a   :  { %2777 = vmatprep.subr.msk.bf16.mxu1 %vm1545_vm10, %v2109_v26  ;;  %v2350_v3 = vmul.f32 %v2344_v17, %v3462_v14  ;;  %v2473_v14 = vmul.f32 %v3866_v10, %v2467_v19 }
 0x62b   :  { %v2232_v25 = vpack.c.bf16 %v2228_v62, %v2228_v62 }
 0x62c   :  { %2784 = vmatmul.mubr.msk.bf16.vlgmr.msra.gmra.mrb[4].mxu0 %vm1541_vm11, %v2357_v61  ;;  %v2354_v31 = vpack.c.bf16 %v2350_v3, %v2350_v3 }
 0x62d   :  { %2497 = vmatpush1.bf16.msra.mxu0 %v2485_v35  ;;  %2528 = vmatprep.mubr.bf16.mxu0 %v3207_v2 }
 0x62e   :  { %v2368_v45 = vsel %vm1545_vm10, %v2354_v31, 0 }
 0x634   :  { %2774 = vmatmul.mubr.msk.bf16.vlgmr.msra.gmra.mrb[4].mxu1 %vm1541_vm11, %v4082_v5  ;;  %v2351_v5 = vmul.f32 %v2347_v6, %v3465_v15  ;;  %v2470_v15 = vsel %vm1236_vm9, %v2466_v40, %v4066_v63  ;;  %v2477_v63 = vpack.c.bf16 %v2473_v14, %v2473_v14 }
 0x635   :  { %2169 = vmatpush1.bf16.msra.mxu1 %v2122_v27  ;;  %2200 = vmatprep.mubr.bf16.mxu1 %v3207_v2  ;;  %v2474_v18 = vmul.f32 %v3857_v21, %v2470_v15 }
 0x636   :  { %2781 = vmatprep.subr.msk.bf16.mxu1 %vm1545_vm10, %v2232_v25  ;;  %v2355_v0 = vpack.c.bf16 %v2351_v5, %v2351_v5  ;;  %v2491_v21 = vsel %vm1545_vm10, %v2477_v63, 0 }
 0x637   :  { %v2478_v39 = vpack.c.bf16 %v2474_v18, %v2474_v18 }
 0x638   :  { %2788 = vmatmul.mubr.msk.bf16.vlgmr.msra.gmra.mrb[4].mxu0 %vm1541_vm11, %v2480_v28 }
 0x640   :  { %2778 = vmatmul.mubr.msk.bf16.vlgmr.msra.gmra.mrb[4].mxu1 %vm1541_vm11, %v4121_v13 }
 0x641   :  { %2292 = vmatpush1.bf16.msra.mxu1 %v2245_v58  ;;  %2323 = vmatprep.mubr.bf16.mxu1 %v3207_v2 }
 0x642   :  { %2785 = vmatprep.subr.msk.bf16.mxu1 %vm1545_vm10, %v2355_v0 }
 0x64c   :  { %2782 = vmatmul.mubr.msk.bf16.vlgmr.msra.gmra.mrb[4].mxu1 %vm1541_vm11, %v2234_v7 }
 0x64d   :  { %2415 = vmatpush1.bf16.msra.mxu1 %v2368_v45  ;;  %2446 = vmatprep.mubr.bf16.mxu1 %v3207_v2 }
 0x64e   :  { %2789 = vmatprep.subr.msk.bf16.mxu1 %vm1545_vm10, %v2478_v39 }
 0x658   :  { %2786 = vmatmul.mubr.msk.bf16.vlgmr.msra.gmra.mrb[4].mxu1 %vm1541_vm11, %v2357_v61 }
 0x659   :  { %2538 = vmatpush1.bf16.msra.mxu1 %v2491_v21  ;;  %2569 = vmatprep.mubr.bf16.mxu1 %v3207_v2 }
 0x664   :  { %2790 = vmatmul.mubr.msk.bf16.vlgmr.msra.gmra.mrb[4].mxu1 %vm1541_vm11, %v2480_v28 }
 0x70b   :  { %v2530_v55 = vpop.f32.mrb[4].mxu0 }
 0x70c   :  { %v2532_v16 = vpop.f32.mrb[5].mxu0 }
 0x70d   :  { %v2534_v50 = vpop.f32.mrb[6].mxu0  ;;  %v2584_v60 = vadd.f32 %v2532_v16, %v2530_v55 }
 0x70e   :  { %v2535_v57 = vpop.f32.mrb[7].mxu0 }
 0x70f   :  { %2585 = vadd.xlane.f32.xlu0 %v2584_v60 }
 0x737   :  { %v2571_v46 = vpop.f32.mrb[4].mxu1 }
 0x738   :  { %v2573_v8 = vpop.f32.mrb[5].mxu1 }
 0x739   :  { %v2620_v13 = vadd.f32 %v2573_v8, %v2571_v46  ;;  %v2575_v10 = vpop.f32.mrb[6].mxu1 }
 0x73a   :  { %v2576_v24 = vpop.f32.mrb[7].mxu1 }
 0x73b   :  { %2621 = vadd.xlane.f32.xlu0 %v2620_v13 }
 0x79c   :  { %v2586_v11 = vpop.xlane.xlu0 %2585 }
 0x79d   :  { %v2587_v29 = vrot.slane %v2586_v11, 4 }
 0x79f   :  { %v2588_v54 = vadd.f32 %v2587_v29, %v2586_v11 }
 0x7a1   :  { %v2589_v34 = vrot.slane %v2588_v54, 2 }
 0x7a3   :  { %v2590_v51 = vadd.f32 %v2589_v34, %v2588_v54 }
 0x7a5   :  { %v2591_v2 = vrot.slane %v2590_v51, 1 }
 0x7a7   :  { %v2592_v20 = vadd.f32 %v2591_v2, %v2590_v51 }
 0x7a9   :  { %2931 = vpush %v2592_v20 }
 0x7c8   :  { %v2622_v32 = vpop.xlane.xlu0 %2621 }
 0x7c9   :  { %v2623_v12 = vrot.slane %v2622_v32, 4 }
 0x7cb   :  { %v2624_v36 = vadd.f32 %v2623_v12, %v2622_v32 }
 0x7cd   :  { %v2625_v61 = vrot.slane %v2624_v36, 2 }
 0x7cf   :  { %v2626_v23 = vadd.f32 %v2625_v61, %v2624_v36 }
 0x7d1   :  { %v2627_v35 = vrot.slane %v2626_v23, 1 }
 0x7d3   :  { %v2628_v37 = vadd.f32 %v2627_v35, %v2626_v23 }
 0x7da   :  { %s2932_s21 = spop %2931 }
 0x7db   :  { %s2596_s0 = smul.f32 0.00048828125, %s2932_s21 }
 0x7dd   :  { %v2597_v4 = vstv %s2596_s0 }
 0x7de   :  { %v2598_v48 = vsub.f32 %v2530_v55, %v2597_v4  ;;  %v2599_v44 = vsub.f32 %v2532_v16, %v2597_v4 }
 0x7e0   :  { %v2600_v30 = vmul.f32 %v2598_v48, %v2598_v48  ;;  %v2601_v7 = vmul.f32 %v2599_v44, %v2599_v44 }
 0x7e2   :  { %v2602_v9 = vadd.f32 %v2601_v7, %v2600_v30 }
 0x7e4   :  { %2603 = vadd.xlane.f32.xlu1 %v2602_v9 }
 0x7f5   :  { %2674 = vperm.xlu1 %2965, %v2582_v52  }
 0x871   :  { %v2604_v43 = vpop.xlane.xlu1 %2603 }
 0x872   :  { %v2605_v41 = vrot.slane %v2604_v43, 4 }
 0x874   :  { %v2606_v49 = vadd.f32 %v2605_v41, %v2604_v43 }
 0x875   :  { %v2675_v0 = vpop.permute.xlu1 %2674 }
 0x876   :  { %v2607_v22 = vrot.slane %v2606_v49, 2 }
 0x878   :  { %v2608_v59 = vadd.f32 %v2607_v22, %v2606_v49 }
 0x87a   :  { %v2609_v1 = vrot.slane %v2608_v59, 1 }
 0x87c   :  { %v2610_v26 = vadd.f32 %v2609_v1, %v2608_v59 }
 0x87e   :  { %2933 = vpush %v2610_v26 }
 0x8af   :  { %s2934_s11 = spop %2933 }
 0x8b0   :  { %s2614_s22 = smul.f32 0.00048828125, %s2934_s11 }
 0x8b2   :  { %s2615_s23 = sadd.f32 1e-05, %s2614_s22 }
 0x8b4   :  { %v2616_v38 = vstv %s2615_s23 }
 0x8b5   :  { %2981 = vrsqrt.f32 %v2616_v38 }
 0x8bf   :  { %v2982_v42 = vpop.eup %2981 }
 0x8c0   :  { %2935 = vpush %v2982_v42 }
 0x8c1   :  { %2937 = vpush %v2628_v37 }
 0x8f1   :  { %s2936_s24 = spop %2935 }
 0x8f2   :  { %s2938_s25 = spop %2937  ;;  %v2619_v6 = vstv %s2936_s24 }
 0x8f3   :  { %s2632_s26 = smul.f32 0.00048828125, %s2938_s25  ;;  %v2677_v58 = vmul.f32 %v2675_v0, %v2619_v6 }
 0x8f5   :  { %v2633_v62 = vstv %s2632_s26  ;;  %v2679_v3 = vmul.f32 %v2677_v58, %v2598_v48  ;;  %v2680_v15 = vmul.f32 %v2677_v58, %v2599_v44 }
 0x8f6   :  { %v2634_v25 = vsub.f32 %v2571_v46, %v2633_v62  ;;  %v2635_v27 = vsub.f32 %v2573_v8, %v2633_v62 }
 0x8f8   :  { %v2636_v53 = vmul.f32 %v2634_v25, %v2634_v25  ;;  %v2637_v28 = vmul.f32 %v2635_v27, %v2635_v27 }
 0x8fa   :  { %v2638_v47 = vadd.f32 %v2637_v28, %v2636_v53 }
 0x8fc   :  { %2639 = vadd.xlane.f32.xlu0 %v2638_v47 }
 0x912   :  { %2685 = vperm.xlu0 %2966, %v2583_v33  }
 0x989   :  { %v2640_v5 = vpop.xlane.xlu0 %2639 }
 0x98a   :  { %v2641_v56 = vrot.slane %v2640_v5, 4 }
 0x98c   :  { %v2642_v17 = vadd.f32 %v2641_v56, %v2640_v5 }
 0x98e   :  { %v2643_v40 = vrot.slane %v2642_v17, 2 }
 0x990   :  { %v2644_v31 = vadd.f32 %v2643_v40, %v2642_v17 }
 0x991   :  { %v2686_v18 = vpop.permute.xlu0 %2685 }
 0x992   :  { %v2688_v39 = vadd.f32 %v2686_v18, %v2679_v3  ;;  %v2689_v45 = vadd.f32 %v2686_v18, %v2680_v15  ;;  %v2645_v19 = vrot.slane %v2644_v31, 1 }
 0x994   :  { %2692 = vst [vmem:[#allocation16] sm:$0xff] %v2688_v39  ;;  %2693 = vst [vmem:[#allocation16 + $0x8] sm:$0xff] %v2689_v45  ;;  %v2646_v14 = vadd.f32 %v2645_v19, %v2644_v31 }
 0x996   :  { %2939 = vpush %v2646_v14 }
 0x9c7   :  { %s2940_s6 = spop %2939 }
 0x9c8   :  { %s2650_s27 = smul.f32 0.00048828125, %s2940_s6 }
 0x9ca   :  { %s2651_s7 = sadd.f32 1e-05, %s2650_s27 }
 0x9cc   :  { %v2652_v63 = vstv %s2651_s7 }
 0x9cd   :  { %2983 = vrsqrt.f32 %v2652_v63 }
 0x9d7   :  { %v2984_v21 = vpop.eup %2983 }
 0x9d8   :  { %2941 = vpush %v2984_v21 }
 0xa09   :  { %s2942_s29 = spop %2941 }
 0xa0a   :  { %v2655_v55 = vstv %s2942_s29 }
 0xa0b   :  { %v2678_v16 = vmul.f32 %v2675_v0, %v2655_v55 }
 0xa0d   :  { %v2681_v50 = vmul.f32 %v2678_v16, %v2634_v25  ;;  %v2682_v60 = vmul.f32 %v2678_v16, %v2635_v27 }
 0xa0f   :  { %v2690_v57 = vadd.f32 %v2686_v18, %v2681_v50  ;;  %v2691_v46 = vadd.f32 %v2686_v18, %v2682_v60 }
 0xa11   :  { %2694 = vst [vmem:[#allocation16 + $0x10] sm:$0xff] %v2690_v57  ;;  %2695 = vst [vmem:[#allocation16 + $0x18] sm:$0xff] %v2691_v46 }
 0xa12   :  { %3172 = shalt.err (!%p3169_p12)
}
 0xa13   :  { %s3173_s5 = scalar_lea.hbm %s4237_s8, 512 }
 0xa14   :  { %p3174_p13 = scmp.ne.s32.totalorder %s4237_s8, %s3173_s5  ;;  %p3177_p0 = scmp.lt.u32.totalorder %s3173_s5, %s4237_s8 }
 0xa16   :  { %p3179_p1 = pnand %p3177_p0, %p3174_p13 }
 0xa18   :  { %3182 = shalt.err (!%p3179_p1)
}
 0xa19   :  { %2705 = dma.vmem_to_hbm [thread:$0]  %s2703_s28, 512, %s4237_s8, [#allocation4]  }
 0xa1a   :  { %3193 = dma.done.wait [#allocation4], 512  }
 0xa1b   :  { %3194 = vsyncadd [#allocation4], 4294966784 }
 0xa1c   :  { %2709 = vsyncpa [#allocation3], 1 }
 0xa1d   :  { %2710 = vsyncpa [#allocation6], 1 }
 0xa1e   :  { %2711 = vsyncpa [#allocation9], 1 }
 0xa1f   :  { %2712 = vsyncpa [#allocation12], 1 }
 0xa20   :  { %2713 = vsyncpa [#allocation15], 1 }
 0xa21   :  { %2714 = vsyncpa [#allocation4], 1 }

</bundles_post_ra>
